<compile_context>
chip_gen: v7x
topology: tpu7x:2x2x1
jax: 0.10.0
libtpu: 0.0.40
codegen_flags: <defaults>
</compile_context>

<pallas_src>
import functools

import jax
import jax.numpy as jnp
from jax.experimental import pallas as pl
from jax.experimental.pallas import tpu as pltpu


def _round_up(v, m):
    return (v + m - 1) // m * m


def _vmem_limit_bytes():
    # ~48 MiB on v7x (64 MiB/TC physical), ~96 MiB on v5e/v6e (128 MiB).
    cap = 64 * 1024 * 1024
    try:
        cap = int(pltpu.get_tpu_info().vmem_capacity_bytes)
    except Exception:
        pass
    return min(cap * 3 // 4, 100 * 1024 * 1024)


# --------------------------- pass 1: conv + BN stats -------------------------
def _conv_stats_kernel(x_ref, wf_ref, y_ref, stats_ref, *, hh, ww, cin):
    """One batch image per grid step: fused separable conv + stat accumulation.

    x_ref:   (H, W, Cin)      f32  NHWC image (no HBM padding; halo built here)
    wf_ref:  (9*Cin, Cpad)    bf16 fused depthwise*pointwise weight
    y_ref:   (H*W, Cpad)      bf16 pre-BN activations (lane-dense)
    stats_ref: (2, Cpad)      f32  [sum(y); sum(y*y)], revisited over the inner axis
    """
    i = pl.program_id(1)

    @pl.when(i == 0)
    def _init():
        stats_ref[...] = jnp.zeros_like(stats_ref)

    # ---- in-VMEM zero halo (replaces wrapper-side jnp.pad in HBM) ----------
    x = x_ref[...]                                                # (H, W, Cin)
    zrow = jnp.zeros((1, ww, cin), jnp.float32)
    zcol = jnp.zeros((hh + 2, 1, cin), jnp.float32)
    xp = jnp.concatenate([zrow, x, zrow], axis=0)                 # (H+2, W, Cin)
    xp = jnp.concatenate([zcol, xp, zcol], axis=1)                # (H+2, W+2, Cin)

    # ---- lhs: 9 shifted taps concatenated on the lane axis -> (H*W, 9*Cin) -
    taps = []
    for dy in range(3):
        for dx in range(3):
            taps.append(xp[dy:dy + hh, dx:dx + ww, :].reshape(hh * ww, cin))
    lhs = jnp.concatenate(taps, axis=-1).astype(jnp.bfloat16)     # (H*W, 9*Cin)

    # ---- fused depthwise(3x3) + pointwise(1x1): ONE MXU matmul, f32 acc ----
    y = jnp.dot(lhs, wf_ref[...], preferred_element_type=jnp.float32)

    # ---- single-pass BN statistics in f32 (two row accumulations) ----------
    stats_ref[0:1, :] += jnp.sum(y, axis=0, keepdims=True)
    stats_ref[1:2, :] += jnp.sum(y * y, axis=0, keepdims=True)

    # ---- lane-dense bf16 intermediate: halves the dominant HBM write -------
    y_ref[...] = y.astype(jnp.bfloat16)


# ------------------ pass 2: normalize + ReLU + NCHW transpose ----------------
def _bn_relu_transpose_kernel(y_ref, ss_ref, out_ref, *, cout):
    """y_ref: (T, Cpad) bf16; ss_ref: (2, Cpad) f32; out_ref: (Cout, T) f32."""
    scale = ss_ref[0:1, :]
    shift = ss_ref[1:2, :]
    z = jnp.maximum(y_ref[...].astype(jnp.float32) * scale + shift, 0.0)
    out_ref[...] = jnp.transpose(z)[0:cout, :]        # XLU transpose, slot is idle


# --------------------------- wrapper -----------------------------------------
@jax.jit
def flatconv_forward(x, dw_weight, pw_weight, gamma, beta, eps=1e-5):
    """FlatConv default path: relu(batchnorm(pointwise(depthwise(x)))).

    x:         (N, Cin, H, W)    float32
    dw_weight: (Cin, 1, 3, 3)    depthwise Conv2d weight (PyTorch layout)
    pw_weight: (Cout, Cin, 1, 1) pointwise Conv2d weight (PyTorch layout)
    gamma, beta: (Cout,)         BatchNorm2d affine parameters
    """
    N, Cin, H, W = x.shape
    Cout = pw_weight.shape[0]
    Cpad = _round_up(Cout, 128)                 # lane-dense output channels
    HW = H * W
    vmem_limit = _vmem_limit_bytes()

    # ---- glue: NHWC (one XLA transpose of the *small* input tensor) --------
    x_nhwc = jnp.transpose(x, (0, 2, 3, 1)).astype(jnp.float32)

    # ---- fused depthwise(3x3) x pointwise(1x1) weight: Wf[tap*Cin + c, co] --
    dw9 = jnp.transpose(dw_weight[:, 0, :, :], (1, 2, 0)).reshape(9, Cin)
    dw9 = dw9.astype(jnp.float32)                                 # [tap, c]
    pw = jnp.transpose(pw_weight[:, :, 0, 0], (1, 0)).astype(jnp.float32)
    wf = (dw9[:, :, None] * pw[None, :, :]).reshape(9 * Cin, Cout)
    wf = jnp.pad(wf, ((0, 0), (0, Cpad - Cout))).astype(jnp.bfloat16)

    # ---- v7x: leading 'parallel' shard axis, per-shard stats slabs ---------
    num_shards = 2 if (N >= 2 and N % 2 == 0) else 1
    per_shard = N // num_shards

    kernel1 = functools.partial(_conv_stats_kernel, hh=H, ww=W, cin=Cin)
    y, stats = pl.pallas_call(
        kernel1,
        out_shape=(jax.ShapeDtypeStruct((N, HW, Cpad), jnp.bfloat16),
                   jax.ShapeDtypeStruct((num_shards, 2, Cpad), jnp.float32)),
        grid=(num_shards, per_shard),
        in_specs=[
            pl.BlockSpec((None, H, W, Cin),
                         lambda s, i: (s * per_shard + i, 0, 0, 0)),
            pl.BlockSpec((9 * Cin, Cpad), lambda s, i: (0, 0)),
        ],
        out_specs=(
            pl.BlockSpec((None, HW, Cpad),
                         lambda s, i: (s * per_shard + i, 0, 0)),
            pl.BlockSpec((None, 2, Cpad), lambda s, i: (s, 0, 0)),  # revisited
        ),
        compiler_params=pltpu.CompilerParams(
            dimension_semantics=("parallel", "arbitrary"),
            vmem_limit_bytes=vmem_limit),
    )(x_nhwc, wf)

    # ---- tiny per-channel BN math (global count, biased variance) ----------
    stats = jnp.sum(stats, axis=0)                                 # (2, Cpad)
    count = jnp.float32(N * HW)
    mean = stats[0:1, :] / count
    var = jnp.maximum(stats[1:2, :] / count - mean * mean, 0.0)
    gamma_p = jnp.pad(gamma.astype(jnp.float32), (0, Cpad - Cout)).reshape(1, Cpad)
    beta_p = jnp.pad(beta.astype(jnp.float32), (0, Cpad - Cout)).reshape(1, Cpad)
    scale = gamma_p * jax.lax.rsqrt(var + eps)
    shift = beta_p - mean * scale
    ss = jnp.concatenate([scale, shift], axis=0)                   # (2, Cpad)

    # ---- pass 2: normalize + ReLU + fused NHWC->NCHW output transpose ------
    if HW % 8 == 0:
        tile_hw = HW if HW <= 2048 else 2048
        kernel2 = functools.partial(_bn_relu_transpose_kernel, cout=Cout)
        out3 = pl.pallas_call(
            kernel2,
            out_shape=jax.ShapeDtypeStruct((N, Cout, HW), jnp.float32),
            grid=(N, pl.cdiv(HW, tile_hw)),
            in_specs=[
                pl.BlockSpec((None, tile_hw, Cpad), lambda n, t: (n, t, 0)),
                pl.BlockSpec((2, Cpad), lambda n, t: (0, 0)),
            ],
            out_specs=pl.BlockSpec((None, Cout, tile_hw), lambda n, t: (n, 0, t)),
            compiler_params=pltpu.CompilerParams(
                dimension_semantics=("parallel", "parallel"),
                vmem_limit_bytes=vmem_limit),
        )(y, ss)
        return out3.reshape(N, Cout, H, W)

    # TODO(synk): odd spatial sizes (H*W % 8 != 0) fall back to an XLA epilogue.
    out = jnp.maximum(y.astype(jnp.float32) * scale[None] + shift[None], 0.0)
    out = out[:, :, :Cout]
    return jnp.transpose(out, (0, 2, 1)).reshape(N, Cout, H, W)


# --------------------------- pure-JAX reference ------------------------------
def flatconv_reference(x, dw_weight, pw_weight, gamma, beta, eps=1e-5):
    cin = x.shape[1]
    y = jax.lax.conv_general_dilated(
        x, dw_weight, window_strides=(1, 1), padding=((1, 1), (1, 1)),
        dimension_numbers=("NCHW", "OIHW", "NCHW"),
        feature_group_count=cin, precision=jax.lax.Precision.HIGHEST)
    y = jax.lax.conv_general_dilated(
        y, pw_weight, window_strides=(1, 1), padding=((0, 0), (0, 0)),
        dimension_numbers=("NCHW", "OIHW", "NCHW"),
        precision=jax.lax.Precision.HIGHEST)
    mean = jnp.mean(y, axis=(0, 2, 3), keepdims=True)
    var = jnp.mean((y - mean) ** 2, axis=(0, 2, 3), keepdims=True)
    y = (y - mean) * jax.lax.rsqrt(var + eps)
    y = y * gamma.reshape(1, -1, 1, 1) + beta.reshape(1, -1, 1, 1)
    return jnp.maximum(y, 0.0)


if __name__ == "__main__":
    key = jax.random.PRNGKey(0)
    kx, kdw, kpw, kg, kb = jax.random.split(key, 5)

    N, Cin, Cout, H, W = 2, 4, 8, 16, 16
    x = jax.random.normal(kx, (N, Cin, H, W), jnp.float32)
    # PyTorch layouts: depthwise (Cin,1,3,3), pointwise (Cout,Cin,1,1)
    dw_w = 0.2 * jax.random.normal(kdw, (Cin, 1, 3, 3), jnp.float32)
    pw_w = 0.2 * jax.random.normal(kpw, (Cout, Cin, 1, 1), jnp.float32)
    gamma = 1.0 + 0.1 * jax.random.normal(kg, (Cout,), jnp.float32)
    beta = 0.1 * jax.random.normal(kb, (Cout,), jnp.float32)

    out = flatconv_forward(x, dw_w, pw_w, gamma, beta)
    out = jax.block_until_ready(out)
    assert out.shape == (N, Cout, H, W)

    ref = flatconv_reference(x, dw_w, pw_w, gamma, beta)
    if not jnp.allclose(out, ref, atol=4e-2, rtol=4e-2):
        raise AssertionError(
            f"mismatch vs reference, max |diff| = {float(jnp.max(jnp.abs(out - ref)))}")

    print("KERNEL_OK")
</pallas_src>

<mosaic_0001>
module attributes {stable_mosaic.version = 11 : i64} {
  func.func @_conv_stats_kernel(%arg0: i32, %arg1: i32, %arg2: memref<1x16x16x4xf32, #tpu.memory_space<vmem>>, %arg3: memref<36x128xbf16, #tpu.memory_space<vmem>>, %arg4: memref<1x256x128xbf16, #tpu.memory_space<vmem>>, %arg5: memref<1x2x128xf32, #tpu.memory_space<vmem>>) attributes {dimension_semantics = [#tpu.dimension_semantics<parallel>, #tpu.dimension_semantics<arbitrary>], iteration_bounds = array<i64: 2, 1>, scalar_prefetch = 0 : i64, scratch_operands = 0 : i64, tpu.core_type = #tpu.core_type<tc>, window_params = [{transform_indices = @transform_0, window_bounds = array<i64: 1, 16, 16, 4>}, {pipeline_mode = #tpu.pipeline_mode<synchronous>, transform_indices = @transform_1, window_bounds = array<i64: 36, 128>}, {transform_indices = @transform_2, window_bounds = array<i64: 1, 256, 128>}, {transform_indices = @transform_3, window_bounds = array<i64: 1, 2, 128>}]} {
    %c0_i32 = arith.constant 0 : i32
    %0 = arith.cmpi eq, %arg1, %c0_i32 : i32
    %1 = arith.extui %0 : i1 to i32
    %c0_i32_0 = arith.constant 0 : i32
    %2 = arith.cmpi ne, %1, %c0_i32_0 : i32
    scf.if %2 {
      %cst_24 = arith.constant 0.000000e+00 : f32
      %52 = vector.broadcast %cst_24 : f32 to vector<2x128xf32>
      %c0_25 = arith.constant 0 : index
      %c0_26 = arith.constant 0 : index
      %c0_27 = arith.constant 0 : index
      %53 = vector.load %arg5[%c0_25, %c0_26, %c0_27] : memref<1x2x128xf32, #tpu.memory_space<vmem>>, vector<1x2x128xf32>
      %54 = vector.shape_cast %53 : vector<1x2x128xf32> to vector<2x128xf32>
      %55 = vector.shape_cast %52 : vector<2x128xf32> to vector<1x2x128xf32>
      tpu.vector_store %arg5[%c0_25, %c0_26, %c0_27], %55 {strides = array<i32>} : memref<1x2x128xf32, #tpu.memory_space<vmem>>, vector<1x2x128xf32>,
    } else {
    }
    %c0 = arith.constant 0 : index
    %c0_1 = arith.constant 0 : index
    %c0_2 = arith.constant 0 : index
    %c0_3 = arith.constant 0 : index
    %3 = vector.load %arg2[%c0, %c0_1, %c0_2, %c0_3] : memref<1x16x16x4xf32, #tpu.memory_space<vmem>>, vector<1x16x16x4xf32>
    %4 = vector.shape_cast %3 : vector<1x16x16x4xf32> to vector<16x16x4xf32>
    %cst = arith.constant 0.000000e+00 : f32
    %5 = vector.broadcast %cst : f32 to vector<1x16x4xf32>
    %cst_4 = arith.constant 0.000000e+00 : f32
    %6 = vector.broadcast %cst_4 : f32 to vector<18x1x4xf32>
    %7 = tpu.concatenate %5, %4, %5 in 0 : vector<1x16x4xf32>, vector<16x16x4xf32>, vector<1x16x4xf32> -> vector<18x16x4xf32>
    %8 = tpu.concatenate %6, %7, %6 in 1 : vector<18x1x4xf32>, vector<18x16x4xf32>, vector<18x1x4xf32> -> vector<18x18x4xf32>
    %9 = vector.extract_strided_slice %8 {offsets = [0, 0, 0], sizes = [16, 16, 4], strides = [1, 1, 1]} : vector<18x18x4xf32> to vector<16x16x4xf32>
    %10 = vector.shape_cast %9 : vector<16x16x4xf32> to vector<256x4xf32>
    %11 = vector.extract_strided_slice %8 {offsets = [0, 1, 0], sizes = [16, 16, 4], strides = [1, 1, 1]} : vector<18x18x4xf32> to vector<16x16x4xf32>
    %12 = vector.shape_cast %11 : vector<16x16x4xf32> to vector<256x4xf32>
    %13 = vector.extract_strided_slice %8 {offsets = [0, 2, 0], sizes = [16, 16, 4], strides = [1, 1, 1]} : vector<18x18x4xf32> to vector<16x16x4xf32>
    %14 = vector.shape_cast %13 : vector<16x16x4xf32> to vector<256x4xf32>
    %15 = vector.extract_strided_slice %8 {offsets = [1, 0, 0], sizes = [16, 16, 4], strides = [1, 1, 1]} : vector<18x18x4xf32> to vector<16x16x4xf32>
    %16 = vector.shape_cast %15 : vector<16x16x4xf32> to vector<256x4xf32>
    %17 = vector.extract_strided_slice %8 {offsets = [1, 1, 0], sizes = [16, 16, 4], strides = [1, 1, 1]} : vector<18x18x4xf32> to vector<16x16x4xf32>
    %18 = vector.shape_cast %17 : vector<16x16x4xf32> to vector<256x4xf32>
    %19 = vector.extract_strided_slice %8 {offsets = [1, 2, 0], sizes = [16, 16, 4], strides = [1, 1, 1]} : vector<18x18x4xf32> to vector<16x16x4xf32>
    %20 = vector.shape_cast %19 : vector<16x16x4xf32> to vector<256x4xf32>
    %21 = vector.extract_strided_slice %8 {offsets = [2, 0, 0], sizes = [16, 16, 4], strides = [1, 1, 1]} : vector<18x18x4xf32> to vector<16x16x4xf32>
    %22 = vector.shape_cast %21 : vector<16x16x4xf32> to vector<256x4xf32>
    %23 = vector.extract_strided_slice %8 {offsets = [2, 1, 0], sizes = [16, 16, 4], strides = [1, 1, 1]} : vector<18x18x4xf32> to vector<16x16x4xf32>
    %24 = vector.shape_cast %23 : vector<16x16x4xf32> to vector<256x4xf32>
    %25 = vector.extract_strided_slice %8 {offsets = [2, 2, 0], sizes = [16, 16, 4], strides = [1, 1, 1]} : vector<18x18x4xf32> to vector<16x16x4xf32>
    %26 = vector.shape_cast %25 : vector<16x16x4xf32> to vector<256x4xf32>
    %27 = tpu.concatenate %10, %12, %14, %16, %18, %20, %22, %24, %26 in 1 : vector<256x4xf32>, vector<256x4xf32>, vector<256x4xf32>, vector<256x4xf32>, vector<256x4xf32>, vector<256x4xf32>, vector<256x4xf32>, vector<256x4xf32>, vector<256x4xf32> -> vector<256x36xf32>
    %28 = arith.truncf %27 : vector<256x36xf32> to vector<256x36xbf16>
    %c0_5 = arith.constant 0 : index
    %c0_6 = arith.constant 0 : index
    %29 = vector.load %arg3[%c0_5, %c0_6] : memref<36x128xbf16, #tpu.memory_space<vmem>>, vector<36x128xbf16>
    %cst_7 = arith.constant dense<0.000000e+00> : vector<256x128xf32>
    %30 = tpu.matmul %28, %29, %cst_7 {dimension_numbers = #tpu.dot_dimension_numbers<[1], [0], [0], [1], [0, 0, 1, 1], [], []>} : vector<256x36xbf16>, vector<36x128xbf16>, vector<256x128xf32> -> vector<256x128xf32>
    %c0_8 = arith.constant 0 : index
    %c0_9 = arith.constant 0 : index
    %c0_10 = arith.constant 0 : index
    %31 = vector.load %arg5[%c0_8, %c0_9, %c0_10] : memref<1x2x128xf32, #tpu.memory_space<vmem>>, vector<1x1x128xf32>
    %32 = vector.shape_cast %31 : vector<1x1x128xf32> to vector<1x128xf32>
    %cst_11 = arith.constant dense<0.000000e+00> : vector<128xf32>
    %33 = vector.multi_reduction <add>, %30, %cst_11 [0] : vector<256x128xf32> to vector<128xf32>
    %34 = vector.shape_cast %33 : vector<128xf32> to vector<1x128xf32>
    %35 = arith.addf %32, %34 : vector<1x128xf32>
    %c0_12 = arith.constant 0 : index
    %c0_13 = arith.constant 0 : index
    %c0_14 = arith.constant 0 : index
    %36 = vector.load %arg5[%c0_12, %c0_13, %c0_14] : memref<1x2x128xf32, #tpu.memory_space<vmem>>, vector<1x1x128xf32>
    %37 = vector.shape_cast %36 : vector<1x1x128xf32> to vector<1x128xf32>
    %38 = vector.shape_cast %35 : vector<1x128xf32> to vector<1x1x128xf32>
    tpu.vector_store %arg5[%c0_12, %c0_13, %c0_14], %38 {strides = array<i32>} : memref<1x2x128xf32, #tpu.memory_space<vmem>>, vector<1x1x128xf32>,
    %c0_15 = arith.constant 0 : index
    %c1 = arith.constant 1 : index
    %c0_16 = arith.constant 0 : index
    %39 = vector.load %arg5[%c0_15, %c1, %c0_16] : memref<1x2x128xf32, #tpu.memory_space<vmem>>, vector<1x1x128xf32>
    %40 = vector.shape_cast %39 : vector<1x1x128xf32> to vector<1x128xf32>
    %41 = arith.mulf %30, %30 : vector<256x128xf32>
    %cst_17 = arith.constant dense<0.000000e+00> : vector<128xf32>
    %42 = vector.multi_reduction <add>, %41, %cst_17 [0] : vector<256x128xf32> to vector<128xf32>
    %43 = vector.shape_cast %42 : vector<128xf32> to vector<1x128xf32>
    %44 = arith.addf %40, %43 : vector<1x128xf32>
    %c0_18 = arith.constant 0 : index
    %c1_19 = arith.constant 1 : index
    %c0_20 = arith.constant 0 : index
    %45 = vector.load %arg5[%c0_18, %c1_19, %c0_20] : memref<1x2x128xf32, #tpu.memory_space<vmem>>, vector<1x1x128xf32>
    %46 = vector.shape_cast %45 : vector<1x1x128xf32> to vector<1x128xf32>
    %47 = vector.shape_cast %44 : vector<1x128xf32> to vector<1x1x128xf32>
    tpu.vector_store %arg5[%c0_18, %c1_19, %c0_20], %47 {strides = array<i32>} : memref<1x2x128xf32, #tpu.memory_space<vmem>>, vector<1x1x128xf32>,
    %48 = arith.truncf %30 : vector<256x128xf32> to vector<256x128xbf16>
    %c0_21 = arith.constant 0 : index
    %c0_22 = arith.constant 0 : index
    %c0_23 = arith.constant 0 : index
    %49 = vector.load %arg4[%c0_21, %c0_22, %c0_23] : memref<1x256x128xbf16, #tpu.memory_space<vmem>>, vector<1x256x128xbf16>
    %50 = vector.shape_cast %49 : vector<1x256x128xbf16> to vector<256x128xbf16>
    %51 = vector.shape_cast %48 : vector<256x128xbf16> to vector<1x256x128xbf16>
    tpu.vector_store %arg4[%c0_21, %c0_22, %c0_23], %51 {strides = array<i32>} : memref<1x256x128xbf16, #tpu.memory_space<vmem>>, vector<1x256x128xbf16>,
    return
  }
  func.func @transform_0(%arg0: i32, %arg1: i32) -> (i32, i32, i32, i32) {
    %c1_i32 = arith.constant 1 : i32
    %0 = arith.muli %arg0, %c1_i32 : i32
    %1 = arith.addi %0, %arg1 : i32
    %c0_i32 = arith.constant 0 : i32
    %c0_i32_0 = arith.constant 0 : i32
    %c0_i32_1 = arith.constant 0 : i32
    %c0_i32_2 = arith.constant 0 : i32
    return %1, %c0_i32, %c0_i32_0, %c0_i32_1 : i32, i32, i32, i32
  }
  func.func @transform_1(%arg0: i32, %arg1: i32) -> (i32, i32) {
    %c0_i32 = arith.constant 0 : i32
    %c0_i32_0 = arith.constant 0 : i32
    %c0_i32_1 = arith.constant 0 : i32
    return %c0_i32, %c0_i32_0 : i32, i32
  }
  func.func @transform_2(%arg0: i32, %arg1: i32) -> (i32, i32, i32) {
    %c1_i32 = arith.constant 1 : i32
    %0 = arith.muli %arg0, %c1_i32 : i32
    %1 = arith.addi %0, %arg1 : i32
    %c0_i32 = arith.constant 0 : i32
    %c0_i32_0 = arith.constant 0 : i32
    %c0_i32_1 = arith.constant 0 : i32
    return %1, %c0_i32, %c0_i32_0 : i32, i32, i32
  }
  func.func @transform_3(%arg0: i32, %arg1: i32) -> (i32, i32, i32) {
    %c0_i32 = arith.constant 0 : i32
    %c0_i32_0 = arith.constant 0 : i32
    %c0_i32_1 = arith.constant 0 : i32
    return %arg0, %c0_i32, %c0_i32_0 : i32, i32, i32
  }
}

module attributes {stable_mosaic.version = 11 : i64} {
  func.func @_bn_relu_transpose_kernel(%arg0: i32, %arg1: i32, %arg2: memref<1x256x128xbf16, #tpu.memory_space<vmem>>, %arg3: memref<2x128xf32, #tpu.memory_space<vmem>>, %arg4: memref<1x8x256xf32, #tpu.memory_space<vmem>>) attributes {dimension_semantics = [#tpu.dimension_semantics<parallel>, #tpu.dimension_semantics<parallel>], iteration_bounds = array<i64: 2, 1>, scalar_prefetch = 0 : i64, scratch_operands = 0 : i64, tpu.core_type = #tpu.core_type<tc>, window_params = [{transform_indices = @transform_0, window_bounds = array<i64: 1, 256, 128>}, {pipeline_mode = #tpu.pipeline_mode<synchronous>, transform_indices = @transform_1, window_bounds = array<i64: 2, 128>}, {transform_indices = @transform_2, window_bounds = array<i64: 1, 8, 256>}]} {
    %c0 = arith.constant 0 : index
    %c0_0 = arith.constant 0 : index
    %0 = vector.load %arg3[%c0, %c0_0] : memref<2x128xf32, #tpu.memory_space<vmem>>, vector<1x128xf32>
    %c1 = arith.constant 1 : index
    %c0_1 = arith.constant 0 : index
    %1 = vector.load %arg3[%c1, %c0_1] : memref<2x128xf32, #tpu.memory_space<vmem>>, vector<1x128xf32>
    %c0_2 = arith.constant 0 : index
    %c0_3 = arith.constant 0 : index
    %c0_4 = arith.constant 0 : index
    %2 = vector.load %arg2[%c0_2, %c0_3, %c0_4] : memref<1x256x128xbf16, #tpu.memory_space<vmem>>, vector<1x256x128xbf16>
    %3 = vector.shape_cast %2 : vector<1x256x128xbf16> to vector<256x128xbf16>
    %4 = arith.extf %3 : vector<256x128xbf16> to vector<256x128xf32>
    %5 = vector.broadcast %0 : vector<1x128xf32> to vector<256x128xf32>
    %6 = arith.mulf %4, %5 : vector<256x128xf32>
    %7 = vector.broadcast %1 : vector<1x128xf32> to vector<256x128xf32>
    %8 = arith.addf %6, %7 : vector<256x128xf32>
    %cst = arith.constant 0.000000e+00 : f32
    %9 = vector.broadcast %cst : f32 to vector<256x128xf32>
    %10 = arith.maximumf %8, %9 : vector<256x128xf32>
    %11 = tpu.transpose %10, [1, 0] : vector<256x128xf32> -> vector<128x256xf32>
    %12 = vector.extract_strided_slice %11 {offsets = [0, 0], sizes = [8, 256], strides = [1, 1]} : vector<128x256xf32> to vector<8x256xf32>
    %c0_5 = arith.constant 0 : index
    %c0_6 = arith.constant 0 : index
    %c0_7 = arith.constant 0 : index
    %13 = vector.load %arg4[%c0_5, %c0_6, %c0_7] : memref<1x8x256xf32, #tpu.memory_space<vmem>>, vector<1x8x256xf32>
    %14 = vector.shape_cast %13 : vector<1x8x256xf32> to vector<8x256xf32>
    %15 = vector.shape_cast %12 : vector<8x256xf32> to vector<1x8x256xf32>
    tpu.vector_store %arg4[%c0_5, %c0_6, %c0_7], %15 {strides = array<i32>} : memref<1x8x256xf32, #tpu.memory_space<vmem>>, vector<1x8x256xf32>,
    return
  }
  func.func @transform_0(%arg0: i32, %arg1: i32) -> (i32, i32, i32) {
    %c0_i32 = arith.constant 0 : i32
    %c0_i32_0 = arith.constant 0 : i32
    return %arg0, %arg1, %c0_i32 : i32, i32, i32
  }
  func.func @transform_1(%arg0: i32, %arg1: i32) -> (i32, i32) {
    %c0_i32 = arith.constant 0 : i32
    %c0_i32_0 = arith.constant 0 : i32
    %c0_i32_1 = arith.constant 0 : i32
    return %c0_i32, %c0_i32_0 : i32, i32
  }
  func.func @transform_2(%arg0: i32, %arg1: i32) -> (i32, i32, i32) {
    %c0_i32 = arith.constant 0 : i32
    %c0_i32_0 = arith.constant 0 : i32
    return %arg0, %c0_i32, %arg1 : i32, i32, i32
  }
}

</mosaic_0001>

<bundles_post_ra>
// kernel: flatconv_forward.3
= control target key start
LH: loop header
LB: loop body
LE: loop exit
PB: predicated region body
PF: predicated region fallthrough
CT: control target
= control target key end

     0   :  { %s663_s9 = smov 0   ;;  %s665_s10 = smov 0   ;;  %s792_s0 = inlined_call_operand.vmem [shape: bf16[2,256,128], index: 0, kind: input, shape index: {}]   ;;  %s793_s1 = inlined_call_operand.vmem [shape: f32[2,128], index: 1, kind: input, shape index: {}]   ;;  %s794_s2 = inlined_call_operand.vmem [shape: f32[2,8,256], index: 2, kind: output, shape index: {}]  }
   0x1   :  { %s667_s11 = smov 0  }
   0x2 LB: > { %s24_s12 = sadd.s32 1, %s642_s10  ;;  %p510_p0 = scmp.ge.s32.totalorder %s646_s11, 1  ;;  %s646_s11 = sphi %s667_s11, %s12_s11   ;;  %s642_s10 = sphi %s665_s10, %s796_s10   ;;  %s638_s9 = sphi %s663_s9, %s795_s9  }
   0x3   : > { %p26_p1 = scmp.ge.s32.totalorder %s24_s12, 2  ;;  %p133_p2 = scmp.lt.s32.totalorder %s646_s11, 3 }
   0x5   : > { %s798_s12 = smov (%p26_p1, %s24_s12), 0  ;;  %p134_p3 = pnand %p510_p0, %p133_p2 }
   0x6   : > { %p164_p4 = scmp.lt.s32.totalorder (!%p134_p3), %s638_s9, 1  ;;  %v692_v0 = vld [vmem:[%s793_s1] ss:$0 sm:$0xff] (!%p134_p3)  ;;  %v701_v9 = vld [vmem:[%s793_s1 + $0x1] ss:$0 sm:$0xff] (!%p134_p3) }
   0x7   : > { %137 = sbr.rel (%p134_p3) target bundleno = 157 (0x9d), region = 28 }
   0xe   : > { %s800_s9 = smov (!%p164_p4, %s638_s9), 1 }
   0xf   : > { %s519_s13 = sshll.u32 %s800_s9, 7  ;;  %s520_s21 = sshll.u32 %s800_s9, 4 }
  0x10   : > { %s687_s16 = scalar_lea.vmem %s792_s0, %s519_s13  ;;  %s181_s24 = scalar_lea.vmem %s794_s2, %s520_s21 }
  0x11   : > { %v592_v1 = vld [vmem:[%s687_s16 + $0x40] sm:$0xff]   ;;  %v593_v3 = vld [vmem:[%s687_s16 + $0x48] sm:$0xff]   ;;  %v594_v24 = vld [vmem:[%s687_s16 + $0x50] sm:$0xff]  }
  0x12   : > { %v522_v2 = vld [vmem:[%s687_s16] sm:$0xff]   ;;  %v555_v4 = vunpack.c.l.bf16 %v592_v1  ;;  %v556_v6 = vunpack.c.h.bf16 %v592_v1  ;;  %v585_v8 = vld [vmem:[%s687_s16 + $0x8] sm:$0xff]   ;;  %v559_v10 = vunpack.c.l.bf16 %v593_v3  ;;  %v560_v18 = vunpack.c.h.bf16 %v593_v3  ;;  %v586_v25 = vld [vmem:[%s687_s16 + $0x10] sm:$0xff]  }
  0x13   : > { %v523_v5 = vunpack.c.l.bf16 %v522_v2  ;;  %v524_v7 = vunpack.c.h.bf16 %v522_v2  ;;  %v527_v11 = vunpack.c.l.bf16 %v585_v8  ;;  %v528_v19 = vunpack.c.h.bf16 %v585_v8  ;;  %v595_v44 = vld [vmem:[%s687_s16 + $0x58] sm:$0xff]   ;;  %v596_v62 = vld [vmem:[%s687_s16 + $0x60] sm:$0xff]  }
  0x14   : > { %v269_v12 = vmul.f32 %v555_v4, %v692_v0  ;;  %v270_v14 = vmul.f32 %v556_v6, %v692_v0  ;;  %v271_v16 = vmul.f32 %v559_v10, %v692_v0  ;;  %v272_v30 = vmul.f32 %v560_v18, %v692_v0  ;;  %v587_v45 = vld [vmem:[%s687_s16 + $0x18] sm:$0xff]   ;;  %v588_v63 = vld [vmem:[%s687_s16 + $0x20] sm:$0xff]   ;;  %v597_v18 = vld [vmem:[%s687_s16 + $0x68] sm:$0xff]  }
  0x15   : > { %v253_v13 = vmul.f32 %v523_v5, %v692_v0  ;;  %v254_v15 = vmul.f32 %v524_v7, %v692_v0  ;;  %v255_v17 = vmul.f32 %v527_v11, %v692_v0  ;;  %v256_v31 = vmul.f32 %v528_v19, %v692_v0  ;;  %v589_v19 = vld [vmem:[%s687_s16 + $0x28] sm:$0xff]  }
  0x16   : > { %v305_v20 = vadd.f32 %v701_v9, %v269_v12  ;;  %v306_v22 = vadd.f32 %v701_v9, %v270_v14  ;;  %v307_v28 = vadd.f32 %v701_v9, %v271_v16  ;;  %v563_v34 = vunpack.c.l.bf16 %v594_v24 }
  0x17   : > { %v289_v21 = vadd.f32 %v701_v9, %v253_v13  ;;  %v290_v23 = vadd.f32 %v701_v9, %v254_v15  ;;  %v291_v29 = vadd.f32 %v701_v9, %v255_v17  ;;  %v531_v35 = vunpack.c.l.bf16 %v586_v25 }
  0x18   : > { %v337_v26 = vmax.f32 %v305_v20, 0.0  ;;  %v338_v32 = vmax.f32 %v306_v22, 0.0  ;;  %v339_v36 = vmax.f32 %v307_v28, 0.0  ;;  %v308_v37 = vadd.f32 %v701_v9, %v272_v30 }
  0x19   : > { %v321_v27 = vmax.f32 %v289_v21, 0.0  ;;  %v322_v33 = vmax.f32 %v290_v23, 0.0  ;;  %v292_v38 = vadd.f32 %v701_v9, %v256_v31  ;;  %v564_v39 = vunpack.c.h.bf16 %v594_v24 }
  0x1a   : > { %385 = vxpose.xlu1.b32.start [1/16] (narrow) %v337_v26, 8  ;;  %v323_v40 = vmax.f32 %v291_v29, 0.0  ;;  %v273_v41 = vmul.f32 %v563_v34, %v692_v0  ;;  %v257_v42 = vmul.f32 %v531_v35, %v692_v0  ;;  %v532_v43 = vunpack.c.h.bf16 %v586_v25 }
  0x1b   : > { %353 = vxpose.xlu0.b32.start [1/16] (narrow) %v321_v27, 8  ;;  %v340_v46 = vmax.f32 %v308_v37, 0.0  ;;  %v274_v47 = vmul.f32 %v564_v39, %v692_v0  ;;  %v567_v48 = vunpack.c.l.bf16 %v595_v44  ;;  %v535_v49 = vunpack.c.l.bf16 %v587_v45  ;;  %v590_v37 = vld [vmem:[%s687_s16 + $0x30] sm:$0xff]  }
  0x1c   : > { %v324_v50 = vmax.f32 %v292_v38, 0.0  ;;  %v309_v51 = vadd.f32 %v701_v9, %v273_v41  ;;  %v293_v52 = vadd.f32 %v701_v9, %v257_v42  ;;  %v258_v53 = vmul.f32 %v532_v43, %v692_v0 }
  0x1d   : > { %v275_v54 = vmul.f32 %v567_v48, %v692_v0  ;;  %v259_v55 = vmul.f32 %v535_v49, %v692_v0  ;;  %v568_v56 = vunpack.c.h.bf16 %v595_v44  ;;  %v536_v57 = vunpack.c.h.bf16 %v587_v45 }
  0x1e   : > { %386 = vxpose.xlu1.b32.cont [2/16] (narrow) %v338_v32, 8  ;;  %v341_v58 = vmax.f32 %v309_v51, 0.0  ;;  %v325_v59 = vmax.f32 %v293_v52, 0.0  ;;  %v310_v60 = vadd.f32 %v701_v9, %v274_v47  ;;  %v294_v61 = vadd.f32 %v701_v9, %v258_v53 }
  0x1f   : > { %354 = vxpose.xlu0.b32.cont [2/16] (narrow) %v322_v33, 8  ;;  %v311_v1 = vadd.f32 %v701_v9, %v275_v54  ;;  %v276_v2 = vmul.f32 %v568_v56, %v692_v0  ;;  %v260_v3 = vmul.f32 %v536_v57, %v692_v0  ;;  %v571_v4 = vunpack.c.l.bf16 %v596_v62  ;;  %v599_v54 = vld [vmem:[%s687_s16 + $0x78] sm:$0xff]  }
  0x20   : > { %v342_v5 = vmax.f32 %v310_v60, 0.0  ;;  %v326_v6 = vmax.f32 %v294_v61, 0.0  ;;  %v295_v7 = vadd.f32 %v701_v9, %v259_v55  ;;  %v539_v8 = vunpack.c.l.bf16 %v588_v63  ;;  %v591_v55 = vld [vmem:[%s687_s16 + $0x38] sm:$0xff]  }
  0x21   : > { %v343_v10 = vmax.f32 %v311_v1, 0.0  ;;  %v312_v11 = vadd.f32 %v701_v9, %v276_v2  ;;  %v296_v12 = vadd.f32 %v701_v9, %v260_v3  ;;  %v277_v13 = vmul.f32 %v571_v4, %v692_v0 }
  0x22   : > { %387 = vxpose.xlu1.b32.cont [3/16] (narrow) %v339_v36, 8  ;;  %v327_v14 = vmax.f32 %v295_v7, 0.0  ;;  %v261_v15 = vmul.f32 %v539_v8, %v692_v0  ;;  %v572_v16 = vunpack.c.h.bf16 %v596_v62  ;;  %v540_v17 = vunpack.c.h.bf16 %v588_v63  ;;  %v598_v36 = vld [vmem:[%s687_s16 + $0x70] sm:$0xff]  }
  0x23   : > { %355 = vxpose.xlu0.b32.cont [3/16] (narrow) %v323_v40, 8  ;;  %v344_v20 = vmax.f32 %v312_v11, 0.0  ;;  %v313_v21 = vadd.f32 %v701_v9, %v277_v13  ;;  %v575_v22 = vunpack.c.l.bf16 %v597_v18  ;;  %v543_v23 = vunpack.c.l.bf16 %v589_v19 }
  0x24   : > { %v328_v24 = vmax.f32 %v296_v12, 0.0  ;;  %v297_v25 = vadd.f32 %v701_v9, %v261_v15  ;;  %v278_v26 = vmul.f32 %v572_v16, %v692_v0  ;;  %v262_v27 = vmul.f32 %v540_v17, %v692_v0 }
  0x25   : > { %v279_v28 = vmul.f32 %v575_v22, %v692_v0  ;;  %v263_v29 = vmul.f32 %v543_v23, %v692_v0  ;;  %v576_v30 = vunpack.c.h.bf16 %v597_v18  ;;  %v544_v31 = vunpack.c.h.bf16 %v589_v19 }
  0x26   : > { %388 = vxpose.xlu1.b32.cont [4/16] (narrow) %v340_v46, 8  ;;  %v345_v32 = vmax.f32 %v313_v21, 0.0  ;;  %v329_v33 = vmax.f32 %v297_v25, 0.0  ;;  %v314_v34 = vadd.f32 %v701_v9, %v278_v26  ;;  %v298_v35 = vadd.f32 %v701_v9, %v262_v27 }
  0x27   : > { %356 = vxpose.xlu0.b32.cont [4/16] (narrow) %v324_v50, 8  ;;  %v315_v38 = vadd.f32 %v701_v9, %v279_v28  ;;  %v280_v39 = vmul.f32 %v576_v30, %v692_v0  ;;  %v264_v40 = vmul.f32 %v544_v31, %v692_v0  ;;  %v579_v41 = vunpack.c.l.bf16 %v598_v36 }
  0x28   : > { %v346_v42 = vmax.f32 %v314_v34, 0.0  ;;  %v330_v43 = vmax.f32 %v298_v35, 0.0  ;;  %v299_v44 = vadd.f32 %v701_v9, %v263_v29  ;;  %v547_v45 = vunpack.c.l.bf16 %v590_v37 }
  0x29   : > { %v347_v46 = vmax.f32 %v315_v38, 0.0  ;;  %v316_v47 = vadd.f32 %v701_v9, %v280_v39  ;;  %v300_v48 = vadd.f32 %v701_v9, %v264_v40  ;;  %v281_v49 = vmul.f32 %v579_v41, %v692_v0 }
  0x2a   : > { %389 = vxpose.xlu1.b32.cont [5/16] (narrow) %v341_v58, 8  ;;  %v331_v50 = vmax.f32 %v299_v44, 0.0  ;;  %v265_v51 = vmul.f32 %v547_v45, %v692_v0  ;;  %v580_v52 = vunpack.c.h.bf16 %v598_v36  ;;  %v548_v53 = vunpack.c.h.bf16 %v590_v37 }
  0x2b   : > { %357 = vxpose.xlu0.b32.cont [5/16] (narrow) %v325_v59, 8  ;;  %v348_v56 = vmax.f32 %v316_v47, 0.0  ;;  %v317_v57 = vadd.f32 %v701_v9, %v281_v49  ;;  %v583_v58 = vunpack.c.l.bf16 %v599_v54  ;;  %v551_v59 = vunpack.c.l.bf16 %v591_v55 }
  0x2c   : > { %v332_v60 = vmax.f32 %v300_v48, 0.0  ;;  %v301_v61 = vadd.f32 %v701_v9, %v265_v51  ;;  %v282_v62 = vmul.f32 %v580_v52, %v692_v0  ;;  %v266_v63 = vmul.f32 %v548_v53, %v692_v0 }
  0x2d   : > { %v283_v1 = vmul.f32 %v583_v58, %v692_v0  ;;  %v267_v2 = vmul.f32 %v551_v59, %v692_v0  ;;  %v584_v3 = vunpack.c.h.bf16 %v599_v54  ;;  %v552_v4 = vunpack.c.h.bf16 %v591_v55 }
  0x2e   : > { %390 = vxpose.xlu1.b32.cont [6/16] (narrow) %v342_v5, 8  ;;  %v349_v5 = vmax.f32 %v317_v57, 0.0  ;;  %v318_v7 = vadd.f32 %v701_v9, %v282_v62  ;;  %v302_v8 = vadd.f32 %v701_v9, %v266_v63 }
  0x2f   : > { %358 = vxpose.xlu0.b32.cont [6/16] (narrow) %v326_v6, 8  ;;  %v333_v6 = vmax.f32 %v301_v61, 0.0  ;;  %v268_v11 = vmul.f32 %v552_v4, %v692_v0  ;;  %v303_v15 = vadd.f32 %v701_v9, %v267_v2 }
  0x30   : > { %v350_v12 = vmax.f32 %v318_v7, 0.0  ;;  %v334_v13 = vmax.f32 %v302_v8, 0.0 }
  0x31   : > { %v335_v17 = vmax.f32 %v303_v15, 0.0  ;;  %v304_v19 = vadd.f32 %v701_v9, %v268_v11 }
  0x32   : > { %391 = vxpose.xlu1.b32.cont [7/16] (narrow) %v343_v10, 8  ;;  %v284_v10 = vmul.f32 %v584_v3, %v692_v0 }
  0x33   : > { %359 = vxpose.xlu0.b32.cont [7/16] (narrow) %v327_v14, 8  ;;  %v319_v14 = vadd.f32 %v701_v9, %v283_v1 }
  0x34   : > { %v320_v18 = vadd.f32 %v701_v9, %v284_v10 }
  0x35   : > { %v351_v16 = vmax.f32 %v319_v14, 0.0 }
  0x36   : > { %392 = vxpose.xlu1.b32.cont [8/16] (narrow) %v344_v20, 8  ;;  %v352_v0 = vmax.f32 %v320_v18, 0.0  ;;  %v336_v20 = vmax.f32 %v304_v19, 0.0 }
  0x37   : > { %360 = vxpose.xlu0.b32.cont [8/16] (narrow) %v328_v24, 8 }
  0x3a   : > { %393 = vxpose.xlu1.b32.cont [9/16] (narrow) %v345_v32, 8 }
  0x3b   : > { %361 = vxpose.xlu0.b32.cont [9/16] (narrow) %v329_v33, 8 }
  0x3e   : > { %394 = vxpose.xlu1.b32.cont [10/16] (narrow) %v346_v42, 8 }
  0x3f   : > { %362 = vxpose.xlu0.b32.cont [10/16] (narrow) %v330_v43, 8 }
  0x42   : > { %395 = vxpose.xlu1.b32.cont [11/16] (narrow) %v347_v46, 8 }
  0x43   : > { %363 = vxpose.xlu0.b32.cont [11/16] (narrow) %v331_v50, 8 }
  0x46   : > { %396 = vxpose.xlu1.b32.cont [12/16] (narrow) %v348_v56, 8 }
  0x47   : > { %364 = vxpose.xlu0.b32.cont [12/16] (narrow) %v332_v60, 8 }
  0x4a   : > { %397 = vxpose.xlu1.b32.cont [13/16] (narrow) %v349_v5, 8 }
  0x4b   : > { %365 = vxpose.xlu0.b32.cont [13/16] (narrow) %v333_v6, 8 }
  0x4e   : > { %398 = vxpose.xlu1.b32.cont [14/16] (narrow) %v350_v12, 8 }
  0x4f   : > { %366 = vxpose.xlu0.b32.cont [14/16] (narrow) %v334_v13, 8 }
  0x52   : > { %399 = vxpose.xlu1.b32.cont [15/16] (narrow) %v351_v16, 8 }
  0x53   : > { %367 = vxpose.xlu0.b32.cont [15/16] (narrow) %v335_v17, 8 }
  0x56   : > { %400 = vxpose.xlu1.b32.end [16/16] (narrow) %v352_v0, 8 }
  0x57   : > { %368 = vxpose.xlu0.b32.end [16/16] (narrow) %v336_v20, 8 }
  0x9a   : > { %v401_v21 = vpop.trf.xlu1 }
  0x9b   : > { %v369_v22 = vpop.trf.xlu0  ;;  %418 = vst [vmem:[%s181_s24 + $0x8] sm:$0xff] %v401_v21 }
  0x9c   : > { %417 = vst [vmem:[%s181_s24] sm:$0xff] %v369_v22 }
  0x9d PF: > { %s12_s11 = sadd.s32 1, %s646_s11   ;;  %s795_s9 = smov %s642_s10 }
  0x9e   : > { %p9_p5 = scmp.ge.s32.totalorder %s12_s11, 4   ;;  %s796_s10 = smov %s798_s12 }
  0xa0   :  { %11 = sbr.rel (!%p9_p5) target bundleno = 2 (0x2), region = 58 }

// kernel: flatconv_forward.2
= control target key start
LH: loop header
LB: loop body
LE: loop exit
PB: predicated region body
PF: predicated region fallthrough
CT: control target
= control target key end

     0   :  { %s3255_s12 = smov 0   ;;  %s3257_s13 = smov 0   ;;  %s4542_s0 = inlined_call_operand.vmem [shape: f32[2,16,16,4], index: 0, kind: input, shape index: {}]   ;;  %s4543_s1 = inlined_call_operand.vmem [shape: bf16[36,128], index: 1, kind: input, shape index: {}]   ;;  %s4544_s2 = inlined_call_operand.vmem [shape: bf16[2,256,128], index: 2, kind: output, shape index: {0}]   ;;  %s4545_s3 = inlined_call_operand.vmem [shape: f32[2,2,128], index: 3, kind: output, shape index: {1}]  }
   0x1   :  { %s3259_s14 = smov 0  }
   0x2 LB: > { %s26_s15 = sadd.s32 1, %s3220_s13  ;;  %p2273_p0 = scmp.ge.s32.totalorder %s3224_s14, 1  ;;  %s3224_s14 = sphi %s3259_s14, %s14_s14   ;;  %s3220_s13 = sphi %s3257_s13, %s4673_s13   ;;  %s3216_s12 = sphi %s3255_s12, %s4672_s12  }
   0x3   : > { %p28_p1 = scmp.ge.s32.totalorder %s26_s15, 2  ;;  %p158_p2 = scmp.lt.s32.totalorder %s3224_s14, 3 }
   0x5   : > { %s4675_s15 = smov (%p28_p1, %s26_s15), 0  ;;  %p159_p3 = pnand %p2273_p0, %p158_p2 }
   0x7   : > { %162 = sbr.rel (%p159_p3) target bundleno = 649 (0x289), region = 28 }
   0xe   : > { %vm277_vm0 = vcmask 1040384   ;;  %p189_p4 = scmp.lt.s32.totalorder %s3216_s12, 1  ;;  %v4546_v0 = vmov 0.0   ;;  %vm443_vm1 = vcmask 1046528   ;;  %vm524_vm2 = vcmask 1045504   ;;  %s3227_s20 = smov 4  }
   0xf   : > { %v3274_v1 = vrot.slane %v4546_v0, 7  ;;  %s3228_s21 = smov 8   ;;  %s3229_s22 = smov 12   ;;  %vm1734_vm3 = vcmask 1041408   ;;  %vm1385_vm4 = vcmask 31744   ;;  %vm1418_vm5 = vcmask 64512  }
  0x10   : > { %s4677_s12 = smov (!%p189_p4, %s3216_s12), 1  ;;  %s3230_s25 = smov 16   ;;  %vm1451_vm6 = vcmask 97280   ;;  %vm1484_vm7 = vcmask 130048   ;;  %vm1517_vm8 = vcmask 162816   ;;  %vm1550_vm9 = vcmask 195584  }
  0x11   : > { %4591 = vst [vmem:[#allocation2_spill] sm:$0xff] %v3274_v1  ;;  %v3280_v2 = vsel %vm277_vm0, 0.0, %v3274_v1  ;;  %v394_v3 = vsel %vm277_vm0, %v3274_v1, 0.0  ;;  %v445_v4 = vrot.slane %v3274_v1, 1  ;;  %v526_v5 = vrot.slane %v3274_v1, 2  ;;  %s2332_s16 = sshll.u32 %s4677_s12, 8 }
  0x12   : > { %4592 = vst [vmem:[#allocation3_spill] sm:$0xff] %v3280_v2  ;;  %v444_v6 = vrot.slane %v3280_v2, 1  ;;  %v447_v7 = vrot.slane %v394_v3, 1  ;;  %v528_v8 = vrot.slane %v394_v3, 2  ;;  %v525_v9 = vrot.slane %v3280_v2, 2  ;;  %s3292_s19 = scalar_lea.vmem %s4542_s0, %s2332_s16  ;;  %s3231_s28 = smov 20  }
  0x13   : > { %v214_v12 = vld [vmem:[%s3292_s19 + $0x10] sm:$0xff]  ;;  %v215_v13 = vld [vmem:[%s3292_s19 + $0x18] sm:$0xff]  ;;  %v212_v14 = vld [vmem:[%s3292_s19] sm:$0xff]  ;;  %s3232_s4 = smov 24   ;;  %s3233_s5 = smov 28   ;;  %vm1583_vm10 = vcmask 228352  }
  0x14   : > { %v446_v10 = vsel %vm443_vm1, %v444_v6, %v445_v4  ;;  %v448_v11 = vsel %vm443_vm1, %v445_v4, %v447_v7  ;;  %v3300_v15 = vsel %vm524_vm2, %v525_v9, %v526_v5  ;;  %v3303_v16 = vsel %vm524_vm2, %v526_v5, %v528_v8  ;;  %v213_v20 = vld [vmem:[%s3292_s19 + $0x8] sm:$0xff]  ;;  %v216_v21 = vld [vmem:[%s3292_s19 + $0x20] sm:$0xff]  ;;  %v218_v27 = vld [vmem:[%s3292_s19 + $0x30] sm:$0xff]  ;;  %s3234_s6 = smov 32   ;;  %s2333_s7 = sshll.u32 %s4677_s12, 7 }
  0x15   : > { %v3305_v17 = vpack.i.bf16 %v448_v11, %v446_v10  ;;  %v283_v18 = vrot.slane %v214_v12, 7  ;;  %v284_v19 = vrot.slane %v215_v13, 7  ;;  %v217_v22 = vld [vmem:[%s3292_s19 + $0x28] sm:$0xff]  ;;  %v280_v23 = vrot.slane %v212_v14, 7  ;;  %v219_v44 = vld [vmem:[%s3292_s19 + $0x38] sm:$0xff]  ;;  %v220_v45 = vld [vmem:[%s3292_s19 + $0x40] sm:$0xff]  ;;  %s4503_s10 = scalar_lea.vmem %s4544_s2, %s2333_s7 }
  0x16   : > { %v281_v24 = vrot.slane %v213_v20, 7  ;;  %v286_v25 = vrot.slane %v216_v21, 7  ;;  %v287_v26 = vrot.slane %v217_v22, 7  ;;  %v289_v31 = vrot.slane %v218_v27, 7  ;;  %v221_v54 = vld [vmem:[%s3292_s19 + $0x48] sm:$0xff]  ;;  %v222_v59 = vld [vmem:[%s3292_s19 + $0x50] sm:$0xff] }
  0x17   : > { %4593 = vst [vmem:[#allocation4_spill] sm:$0xff] %v3305_v17  ;;  %2560 = vrot.lane.b32.xlu0 %v3305_v17, %s3227_s20  ;;  %v3314_v28 = vsel %vm277_vm0, %v283_v18, %v284_v19  ;;  %v3317_v29 = vsel %vm277_vm0, 0.0, %v283_v18  ;;  %v3320_v30 = vsel %vm277_vm0, %v284_v19, 0.0  ;;  %v3330_v37 = vsel %vm277_vm0, 0.0, %v280_v23  ;;  %v223_v3 = vld [vmem:[%s3292_s19 + $0x58] sm:$0xff]  ;;  %s2278_s11 = sshll.u32 %s4677_s12, 1 }
  0x18   : > { %v454_v32 = vrot.slane %v3317_v29, 1  ;;  %v455_v33 = vrot.slane %v3314_v28, 1  ;;  %v457_v34 = vrot.slane %v3320_v30, 1  ;;  %v3327_v36 = vsel %vm277_vm0, %v280_v23, %v281_v24  ;;  %v224_v23 = vld [vmem:[%s3292_s19 + $0x60] sm:$0xff]  ;;  %s4513_s18 = scalar_lea.vmem %s4545_s3, %s2278_s11 }
  0x19   : > { %v3333_v38 = vsel %vm277_vm0, %v281_v24, 0.0  ;;  %v3336_v39 = vsel %vm277_vm0, %v286_v25, %v287_v26  ;;  %v449_v42 = vrot.slane %v3330_v37, 1  ;;  %v450_v43 = vrot.slane %v3327_v36, 1  ;;  %v225_v24 = vld [vmem:[%s3292_s19 + $0x68] sm:$0xff] }
  0x1a   : > { %v456_v40 = vsel %vm443_vm1, %v454_v32, %v455_v33  ;;  %v458_v41 = vsel %vm443_vm1, %v455_v33, %v457_v34  ;;  %v452_v47 = vrot.slane %v3333_v38, 1  ;;  %v3348_v48 = vsel %vm277_vm0, 0.0, %v286_v25  ;;  %v226_v32 = vld [vmem:[%s3292_s19 + $0x70] sm:$0xff]  ;;  %v227_v33 = vld [vmem:[%s3292_s19 + $0x78] sm:$0xff]  ;;  %v228_v34 = vld [vmem:[%s3292_s19 + $0x80] sm:$0xff] }
  0x1b   : > { %v3344_v46 = vpack.i.bf16 %v458_v41, %v456_v40  ;;  %v3351_v49 = vsel %vm277_vm0, %v287_v26, 0.0  ;;  %v451_v50 = vsel %vm443_vm1, %v449_v42, %v450_v43  ;;  %v459_v51 = vrot.slane %v3348_v48, 1 }
  0x1c   : > { %v460_v52 = vrot.slane %v3336_v39, 1  ;;  %v462_v53 = vrot.slane %v3351_v49, 1  ;;  %v453_v55 = vsel %vm443_vm1, %v450_v43, %v452_v47  ;;  %v290_v56 = vrot.slane %v219_v44, 7 }
  0x1d   : > { %4594 = vst [vmem:[#allocation5_spill] sm:$0xff] %v3344_v46  ;;  %2570 = vrot.lane.b32.xlu1 %v3344_v46, %s3227_s20  ;;  %v3362_v57 = vsel %vm277_vm0, 0.0, %v289_v31  ;;  %v292_v58 = vrot.slane %v220_v45, 7  ;;  %v3365_v60 = vpack.i.bf16 %v453_v55, %v451_v50  ;;  %v293_v7 = vrot.slane %v221_v54, 7  ;;  %v229_v54 = vld [vmem:[%s3292_s19 + $0x88] sm:$0xff] }
  0x1e   : > { %4595 = vst [vmem:[#allocation6_spill] sm:$0xff] %v3362_v57  ;;  %v461_v61 = vsel %vm443_vm1, %v459_v51, %v460_v52  ;;  %v463_v62 = vsel %vm443_vm1, %v460_v52, %v462_v53  ;;  %v464_v63 = vrot.slane %v3362_v57, 1  ;;  %v3374_v5 = vsel %vm277_vm0, %v289_v31, %v290_v56 }
  0x1f   : > { %v3371_v4 = vpack.i.bf16 %v463_v62, %v461_v61  ;;  %4597 = vst [vmem:[#allocation8_spill] sm:$0xff] %v3374_v5  ;;  %v3377_v6 = vsel %vm277_vm0, %v290_v56, 0.0  ;;  %2565 = vrot.lane.b32.xlu0 %v3365_v60, %s3227_s20  ;;  %v465_v8 = vrot.slane %v3374_v5, 1  ;;  %v3384_v10 = vsel %vm277_vm0, 0.0, %v292_v58 }
  0x20   : > { %v467_v9 = vrot.slane %v3377_v6, 1  ;;  %4598 = vst [vmem:[#allocation9_spill] sm:$0xff] %v3384_v10  ;;  %v295_v11 = vrot.slane %v222_v59, 7  ;;  %v3389_v12 = vsel %vm277_vm0, %v292_v58, %v293_v7  ;;  %v3392_v13 = vsel %vm277_vm0, %v293_v7, 0.0 }
  0x21   : > { %4596 = vst [vmem:[#allocation7_spill] sm:$0xff] %v3371_v4  ;;  %2575 = vrot.lane.b32.xlu1 %v3371_v4, %s3227_s20  ;;  %4599 = vst [vmem:[#allocation10_spill] sm:$0xff] %v3389_v12  ;;  %v469_v14 = vrot.slane %v3384_v10, 1  ;;  %v296_v18 = vrot.slane %v223_v3, 7  ;;  %v466_v19 = vsel %vm443_vm1, %v464_v63, %v465_v8  ;;  %v470_v21 = vrot.slane %v3389_v12, 1 }
  0x22   : > { %v468_v20 = vsel %vm443_vm1, %v465_v8, %v467_v9  ;;  %v472_v22 = vrot.slane %v3392_v13, 1  ;;  %v3407_v27 = vsel %vm277_vm0, 0.0, %v295_v11  ;;  %v298_v47 = vrot.slane %v224_v23, 7  ;;  %v231_v23 = vld [vmem:[%s3292_s19 + $0x98] sm:$0xff] }
  0x23   : > { %v3401_v25 = vpack.i.bf16 %v468_v20, %v466_v19  ;;  %v3404_v26 = vsel %vm277_vm0, %v295_v11, %v296_v18  ;;  %4602 = vst [vmem:[#allocation13_spill] sm:$0xff] %v3407_v27  ;;  %v3410_v31 = vsel %vm277_vm0, %v296_v18, 0.0  ;;  %v471_v40 = vsel %vm443_vm1, %v469_v14, %v470_v21 }
  0x24   : > { %4601 = vst [vmem:[#allocation12_spill] sm:$0xff] %v3404_v26  ;;  %v473_v41 = vsel %vm443_vm1, %v470_v21, %v472_v22  ;;  %v474_v42 = vrot.slane %v3407_v27, 1  ;;  %v475_v43 = vrot.slane %v3404_v26, 1  ;;  %v477_v45 = vrot.slane %v3410_v31, 1  ;;  %v230_v22 = vld [vmem:[%s3292_s19 + $0x90] sm:$0xff] }
  0x25   : > { %4600 = vst [vmem:[#allocation11_spill] sm:$0xff] %v3401_v25  ;;  %2580 = vrot.lane.b32.xlu0 %v3401_v25, %s3227_s20  ;;  %v3421_v44 = vpack.i.bf16 %v473_v41, %v471_v40  ;;  %v299_v50 = vrot.slane %v225_v24, 7  ;;  %v301_v52 = vrot.slane %v226_v32, 7  ;;  %v302_v53 = vrot.slane %v227_v33, 7  ;;  %v232_v40 = vld [vmem:[%s3292_s19 + $0xa0] sm:$0xff]  ;;  %v233_v41 = vld [vmem:[%s3292_s19 + $0xa8] sm:$0xff] }
  0x26   : > { %v476_v51 = vsel %vm443_vm1, %v474_v42, %v475_v43  ;;  %v304_v55 = vrot.slane %v228_v34, 7  ;;  %v478_v56 = vsel %vm443_vm1, %v475_v43, %v477_v45  ;;  %v3433_v59 = vsel %vm277_vm0, 0.0, %v298_v47 }
  0x27   : > { %4603 = vst [vmem:[#allocation14_spill] sm:$0xff] %v3421_v44  ;;  %2585 = vrot.lane.b32.xlu1 %v3421_v44, %s3227_s20  ;;  %v3430_v58 = vsel %vm277_vm0, %v298_v47, %v299_v50  ;;  %v3436_v61 = vsel %vm277_vm0, %v299_v50, 0.0  ;;  %v3438_v62 = vpack.i.bf16 %v478_v56, %v476_v51  ;;  %v479_v63 = vrot.slane %v3433_v59, 1 }
  0x28   : > { %v480_v3 = vrot.slane %v3430_v58, 1  ;;  %v482_v7 = vrot.slane %v3436_v61, 1  ;;  %v3444_v8 = vsel %vm277_vm0, %v301_v52, %v302_v53  ;;  %v3447_v9 = vsel %vm277_vm0, 0.0, %v301_v52 }
  0x29   : > { %4604 = vst [vmem:[#allocation15_spill] sm:$0xff] %v3438_v62  ;;  %v3450_v11 = vsel %vm277_vm0, %v302_v53, 0.0  ;;  %v305_v14 = vrot.slane %v229_v54, 7  ;;  %2590 = vrot.lane.b32.xlu0 %v3438_v62, %s3227_s20  ;;  %v484_v20 = vrot.slane %v3447_v9, 1  ;;  %v485_v21 = vrot.slane %v3444_v8, 1 }
  0x2a   : > { %v481_v18 = vsel %vm443_vm1, %v479_v63, %v480_v3  ;;  %v483_v19 = vsel %vm443_vm1, %v480_v3, %v482_v7  ;;  %v487_v32 = vrot.slane %v3450_v11, 1  ;;  %v3467_v34 = vsel %vm277_vm0, 0.0, %v304_v55  ;;  %v234_v3 = vld [vmem:[%s3292_s19 + $0xb0] sm:$0xff] }
  0x2b   : > { %v3460_v24 = vpack.i.bf16 %v483_v19, %v481_v18  ;;  %v3464_v33 = vsel %vm277_vm0, %v304_v55, %v305_v14  ;;  %v486_v42 = vsel %vm443_vm1, %v484_v20, %v485_v21  ;;  %v3473_v43 = vsel %vm277_vm0, %v305_v14, 0.0 }
  0x2c   : > { %v489_v45 = vrot.slane %v3467_v34, 1  ;;  %v490_v47 = vrot.slane %v3464_v33, 1  ;;  %v488_v50 = vsel %vm443_vm1, %v485_v21, %v487_v32  ;;  %v492_v51 = vrot.slane %v3473_v43, 1  ;;  %v235_v32 = vld [vmem:[%s3292_s19 + $0xb8] sm:$0xff] }
  0x2d   : > { %4605 = vst [vmem:[#allocation16_spill] sm:$0xff] %v3460_v24  ;;  %2595 = vrot.lane.b32.xlu1 %v3460_v24, %s3227_s20  ;;  %v307_v52 = vrot.slane %v230_v22, 7  ;;  %v308_v53 = vrot.slane %v231_v23, 7  ;;  %v3481_v54 = vpack.i.bf16 %v488_v50, %v486_v42  ;;  %v310_v56 = vrot.slane %v232_v40, 7  ;;  %v237_v50 = vld [vmem:[%s3292_s19 + $0xc8] sm:$0xff] }
  0x2e   : > { %v491_v55 = vsel %vm443_vm1, %v489_v45, %v490_v47  ;;  %v311_v63 = vrot.slane %v233_v41, 7  ;;  %v493_v7 = vsel %vm443_vm1, %v490_v47, %v492_v51  ;;  %v313_v45 = vrot.slane %v234_v3, 7  ;;  %v236_v47 = vld [vmem:[%s3292_s19 + $0xc0] sm:$0xff] }
  0x2f   : > { %4606 = vst [vmem:[#allocation17_spill] sm:$0xff] %v3481_v54  ;;  %v3487_v14 = vsel %vm277_vm0, %v307_v52, %v308_v53  ;;  %v3490_v18 = vsel %vm277_vm0, 0.0, %v307_v52  ;;  %v3493_v19 = vsel %vm277_vm0, %v308_v53, 0.0  ;;  %2600 = vrot.lane.b32.xlu0 %v3481_v54, %s3227_s20  ;;  %v3497_v20 = vpack.i.bf16 %v493_v7, %v491_v55 }
  0x30   : > { %v494_v21 = vrot.slane %v3490_v18, 1  ;;  %v495_v22 = vrot.slane %v3487_v14, 1  ;;  %v497_v23 = vrot.slane %v3493_v19, 1  ;;  %v3504_v40 = vsel %vm277_vm0, %v310_v56, %v311_v63 }
  0x31   : > { %4607 = vst [vmem:[#allocation18_spill] sm:$0xff] %v3497_v20  ;;  %v3507_v41 = vsel %vm277_vm0, 0.0, %v310_v56  ;;  %v3510_v42 = vsel %vm277_vm0, %v311_v63, 0.0  ;;  %2605 = vrot.lane.b32.xlu1 %v3497_v20, %s3227_s20  ;;  %v500_v55 = vrot.slane %v3504_v40, 1  ;;  %v238_v56 = vld [vmem:[%s3292_s19 + $0xd0] sm:$0xff]  ;;  %v314_v3 = vrot.slane %v235_v32, 7 }
  0x32   : > { %v496_v51 = vsel %vm443_vm1, %v494_v21, %v495_v22  ;;  %v498_v52 = vsel %vm443_vm1, %v495_v22, %v497_v23  ;;  %v499_v53 = vrot.slane %v3507_v41, 1  ;;  %v502_v63 = vrot.slane %v3510_v42, 1  ;;  %v239_v22 = vld [vmem:[%s3292_s19 + $0xd8] sm:$0xff]  ;;  %v240_v20 = vld [vmem:[%s3292_s19 + $0xe0] sm:$0xff] }
  0x33   : > { %v3521_v7 = vpack.i.bf16 %v498_v52, %v496_v51  ;;  %v3525_v0 = vsel %vm277_vm0, 0.0, %v313_v45  ;;  %v316_v21 = vrot.slane %v236_v47, 7  ;;  %v317_v2 = vrot.slane %v237_v50, 7 }
  0x34   : > { %v501_v35 = vsel %vm443_vm1, %v499_v53, %v500_v55  ;;  %v504_v17 = vrot.slane %v3525_v0, 1  ;;  %v503_v23 = vsel %vm443_vm1, %v500_v55, %v502_v63  ;;  %v3534_v51 = vsel %vm277_vm0, %v313_v45, %v314_v3 }
  0x35   : > { %4608 = vst [vmem:[#allocation19_spill] sm:$0xff] %v3521_v7  ;;  %2610 = vrot.lane.b32.xlu0 %v3521_v7, %s3227_s20  ;;  %v3537_v32 = vsel %vm277_vm0, %v314_v3, 0.0  ;;  %v319_v52 = vrot.slane %v238_v56, 7  ;;  %v3539_v53 = vpack.i.bf16 %v503_v23, %v501_v35  ;;  %v505_v47 = vrot.slane %v3534_v51, 1 }
  0x36   : > { %v507_v50 = vrot.slane %v3537_v32, 1  ;;  %v3544_v1 = vsel %vm277_vm0, %v316_v21, %v317_v2  ;;  %v3547_v55 = vsel %vm277_vm0, 0.0, %v316_v21  ;;  %v3550_v45 = vsel %vm277_vm0, %v317_v2, 0.0  ;;  %v241_v21 = vld [vmem:[%s3292_s19 + $0xe8] sm:$0xff] }
  0x37   : > { %4609 = vst [vmem:[#allocation20_spill] sm:$0xff] %v3539_v53  ;;  %v510_v63 = vrot.slane %v3544_v1, 1  ;;  %v320_v3 = vrot.slane %v239_v22, 7  ;;  %2615 = vrot.lane.b32.xlu1 %v3539_v53, %s3227_s20  ;;  %v506_v35 = vsel %vm443_vm1, %v504_v17, %v505_v47  ;;  %v509_v23 = vrot.slane %v3547_v55, 1 }
  0x38   : > { %v508_v56 = vsel %vm443_vm1, %v505_v47, %v507_v50  ;;  %v512_v7 = vrot.slane %v3550_v45, 1  ;;  %v3567_v22 = vsel %vm277_vm0, 0.0, %v319_v52  ;;  %v323_v62 = vrot.slane %v241_v21, 7 }
  0x39   : > { %v3561_v54 = vpack.i.bf16 %v508_v56, %v506_v35  ;;  %v3564_v2 = vsel %vm277_vm0, %v319_v52, %v320_v3  ;;  %v3570_v53 = vsel %vm277_vm0, %v320_v3, 0.0  ;;  %v511_v17 = vsel %vm443_vm1, %v509_v23, %v510_v63 }
  0x3a   : > { %v513_v47 = vsel %vm443_vm1, %v510_v63, %v512_v7  ;;  %v514_v50 = vrot.slane %v3567_v22, 1  ;;  %v515_v24 = vrot.slane %v3564_v2, 1  ;;  %v517_v56 = vrot.slane %v3570_v53, 1 }
  0x3b   : > { %4610 = vst [vmem:[#allocation21_spill] sm:$0xff] %v3561_v54  ;;  %2620 = vrot.lane.b32.xlu0 %v3561_v54, %s3227_s20  ;;  %v3578_v35 = vpack.i.bf16 %v513_v47, %v511_v17  ;;  %v322_v52 = vrot.slane %v240_v20, 7  ;;  %v3584_v23 = vpack.i.bf16 %v3303_v16, %v3300_v15  ;;  %v530_v7 = vrot.slane %v3330_v37, 2 }
  0x3c   : > { %v516_v3 = vsel %vm443_vm1, %v514_v50, %v515_v24  ;;  %v518_v63 = vsel %vm443_vm1, %v515_v24, %v517_v56  ;;  %v3597_v20 = vsel %vm277_vm0, %v323_v62, 0.0  ;;  %v533_v24 = vrot.slane %v3333_v38, 2 }
  0x3d   : > { %4611 = vst [vmem:[#allocation22_spill] sm:$0xff] %v3578_v35  ;;  %4612 = vst [vmem:[#allocation23_spill] sm:$0xff] %v3584_v23  ;;  %2625 = vrot.lane.b32.xlu1 %v3578_v35, %s3227_s20  ;;  %v3591_v17 = vsel %vm277_vm0, %v322_v52, %v323_v62  ;;  %v3594_v47 = vsel %vm277_vm0, 0.0, %v322_v52  ;;  %v3599_v21 = vpack.i.bf16 %v518_v63, %v516_v3  ;;  %v522_v50 = vrot.slane %v3597_v20, 1 }
  0x3e   : > { %v519_v15 = vrot.slane %v3594_v47, 1  ;;  %v520_v16 = vrot.slane %v3591_v17, 1  ;;  %v531_v35 = vrot.slane %v3327_v36, 2  ;;  %v535_v56 = vrot.slane %v3317_v29, 2 }
  0x3f   : > { %4613 = vst [vmem:[#allocation24_spill] sm:$0xff] %v3599_v21  ;;  %v536_v52 = vrot.slane %v3314_v28, 2  ;;  %2630 = vrot.lane.b32.xlu0 %v3599_v21, %s3227_s20  ;;  %v540_v63 = vrot.slane %v3348_v48, 2  ;;  %v541_v54 = vrot.slane %v3336_v39, 2  ;;  %v4614_v21 = vrot.slane %v3320_v30, 2 }
  0x40   : > { %v521_v62 = vsel %vm443_vm1, %v519_v15, %v520_v16  ;;  %v523_v3 = vsel %vm443_vm1, %v520_v16, %v522_v50  ;;  %v532_v25 = vsel %vm524_vm2, %v530_v7, %v531_v35  ;;  %v534_v38 = vsel %vm524_vm2, %v531_v35, %v533_v24 }
  0x41   : > { %v3614_v44 = vpack.i.bf16 %v523_v3, %v521_v62  ;;  %v537_v4 = vsel %vm524_vm2, %v535_v56, %v536_v52  ;;  %v3619_v46 = vpack.i.bf16 %v534_v38, %v532_v25  ;;  %v539_v15 = vsel %vm524_vm2, %v536_v52, %v4614_v21 }
  0x42   : > { %v542_v16 = vsel %vm524_vm2, %v540_v63, %v541_v54  ;;  %v543_v50 = vrot.slane %v3351_v49, 2  ;;  %v3628_v62 = vpack.i.bf16 %v539_v15, %v537_v4  ;;  %v545_v7 = vrot.slane %v3362_v57, 2 }
  0x43   : > { %2635 = vrot.lane.b32.xlu1 %v3614_v44, %s3227_s20  ;;  %v546_v35 = vrot.slane %v3374_v5, 2  ;;  %v548_v25 = vrot.slane %v3377_v6, 2  ;;  %2640 = vrot.lane.b32.xlu0 %v3584_v23, %s3228_s21  ;;  %v550_v21 = vrot.slane %v3384_v10, 2  ;;  %v551_v49 = vrot.slane %v3389_v12, 2 }
  0x44   : > { %v544_v30 = vsel %vm524_vm2, %v541_v54, %v543_v50  ;;  %v553_v24 = vrot.slane %v3392_v13, 2  ;;  %v555_v52 = vrot.slane %v3407_v27, 2  ;;  %v556_v63 = vrot.slane %v3404_v26, 2 }
  0x45   : > { %v547_v4 = vsel %vm524_vm2, %v545_v7, %v546_v35  ;;  %v549_v56 = vsel %vm524_vm2, %v546_v35, %v548_v25  ;;  %v3642_v3 = vpack.i.bf16 %v544_v30, %v542_v16  ;;  %v552_v6 = vsel %vm524_vm2, %v550_v21, %v551_v49 }
  0x46   : > { %v554_v54 = vsel %vm524_vm2, %v551_v49, %v553_v24  ;;  %v558_v38 = vrot.slane %v3410_v31, 2  ;;  %v560_v13 = vrot.slane %v3433_v59, 2  ;;  %v561_v15 = vrot.slane %v3430_v58, 2 }
  0x47   : > { %2645 = vrot.lane.b32.xlu1 %v3619_v46, %s3228_s21  ;;  %2650 = vrot.lane.b32.xlu0 %v3628_v62, %s3228_s21  ;;  %v3654_v16 = vpack.i.bf16 %v549_v56, %v547_v4  ;;  %v557_v50 = vsel %vm524_vm2, %v555_v52, %v556_v63  ;;  %v563_v7 = vrot.slane %v3436_v61, 2  ;;  %v565_v25 = vrot.slane %v3447_v9, 2 }
  0x48   : > { %v559_v35 = vsel %vm524_vm2, %v556_v63, %v558_v38  ;;  %v566_v30 = vrot.slane %v3444_v8, 2  ;;  %v568_v31 = vrot.slane %v3450_v11, 2  ;;  %v3662_v21 = vpack.i.bf16 %v554_v54, %v552_v6 }
  0x49   : > { %v3666_v49 = vpack.i.bf16 %v559_v35, %v557_v50  ;;  %v562_v24 = vsel %vm524_vm2, %v560_v13, %v561_v15  ;;  %v564_v4 = vsel %vm524_vm2, %v561_v15, %v563_v7  ;;  %v570_v61 = vrot.slane %v3467_v34, 2 }
  0x4a   : > { %v571_v56 = vrot.slane %v3464_v33, 2  ;;  %v573_v11 = vrot.slane %v3473_v43, 2  ;;  %v575_v52 = vrot.slane %v3490_v18, 2  ;;  %v576_v6 = vrot.slane %v3487_v14, 2 }
  0x4b   : > { %2655 = vrot.lane.b32.xlu1 %v3642_v3, %s3228_s21  ;;  %2660 = vrot.lane.b32.xlu0 %v3654_v16, %s3228_s21  ;;  %v567_v63 = vsel %vm524_vm2, %v565_v25, %v566_v30  ;;  %v569_v54 = vsel %vm524_vm2, %v566_v30, %v568_v31  ;;  %v578_v38 = vrot.slane %v3493_v19, 2  ;;  %v3682_v13 = vpack.i.bf16 %v564_v4, %v562_v24 }
  0x4c   : > { %v580_v15 = vrot.slane %v3507_v41, 2  ;;  %v581_v50 = vrot.slane %v3504_v40, 2  ;;  %v583_v43 = vrot.slane %v3510_v42, 2  ;;  %v3689_v7 = vpack.i.bf16 %v569_v54, %v567_v63 }
  0x4d   : > { %v572_v35 = vsel %vm524_vm2, %v570_v61, %v571_v56  ;;  %v574_v19 = vsel %vm524_vm2, %v571_v56, %v573_v11  ;;  %v577_v25 = vsel %vm524_vm2, %v575_v52, %v576_v6  ;;  %v579_v30 = vsel %vm524_vm2, %v576_v6, %v578_v38 }
  0x4e   : > { %v585_v31 = vrot.slane %v3525_v0, 2  ;;  %v586_v24 = vrot.slane %v3534_v51, 2  ;;  %v588_v4 = vrot.slane %v3537_v32, 2  ;;  %v590_v42 = vrot.slane %v3547_v55, 2 }
  0x4f   : > { %2665 = vrot.lane.b32.xlu1 %v3662_v21, %s3228_s21  ;;  %2670 = vrot.lane.b32.xlu0 %v3666_v49, %s3228_s21  ;;  %v591_v23 = vrot.slane %v3544_v1, 2  ;;  %v593_v63 = vrot.slane %v3550_v45, 2  ;;  %v3703_v61 = vpack.i.bf16 %v574_v19, %v572_v35  ;;  %v582_v56 = vsel %vm524_vm2, %v580_v15, %v581_v50 }
  0x50   : > { %v584_v11 = vsel %vm524_vm2, %v581_v50, %v583_v43  ;;  %v3709_v52 = vpack.i.bf16 %v579_v30, %v577_v25  ;;  %v595_v32 = vrot.slane %v3567_v22, 2  ;;  %v596_v6 = vrot.slane %v3564_v2, 2 }
  0x51   : > { %v598_v45 = vrot.slane %v3570_v53, 2  ;;  %v587_v54 = vsel %vm524_vm2, %v585_v31, %v586_v24  ;;  %v589_v38 = vsel %vm524_vm2, %v586_v24, %v588_v4  ;;  %v3716_v35 = vpack.i.bf16 %v584_v11, %v582_v56 }
  0x52   : > { %v592_v15 = vsel %vm524_vm2, %v590_v42, %v591_v23  ;;  %v594_v50 = vsel %vm524_vm2, %v591_v23, %v593_v63  ;;  %v600_v43 = vrot.slane %v3594_v47, 2  ;;  %v601_v19 = vrot.slane %v3591_v17, 2 }
  0x53   : > { %2675 = vrot.lane.b32.xlu1 %v3682_v13, %s3228_s21  ;;  %2680 = vrot.lane.b32.xlu0 %v3689_v7, %s3228_s21  ;;  %v3726_v53 = vpack.i.bf16 %v589_v38, %v587_v54  ;;  %v597_v25 = vsel %vm524_vm2, %v595_v32, %v596_v6  ;;  %v599_v30 = vsel %vm524_vm2, %v596_v6, %v598_v45  ;;  %v603_v31 = vrot.slane %v3597_v20, 2  ;;  %v3199_v38 = vld [vmem:[%s4543_s1] sm:$0xff]  }
  0x54   : > { %v3731_v24 = vpack.i.bf16 %v594_v50, %v592_v15  ;;  %v3735_v23 = vpack.i.bf16 %v599_v30, %v597_v25  ;;  %v602_v4 = vsel %vm524_vm2, %v600_v43, %v601_v19  ;;  %v2719_v20 = vpack.i.bf16 %v3327_v36, %v3330_v37  ;;  %2480 = vmatprep.subr.bf16.mxu0 %v3199_v38  ;;  %v3200_v15 = vld [vmem:[%s4543_s1 + $0x8] sm:$0xff]   ;;  %v4615_v50 = vld [vmem:[#allocation5_spill] sm:$0xff]  ;;  %v3201_v43 = vld [vmem:[%s4543_s1 + $0x10] ss:$0 sps:$4 sm:$0x33]  }
  0x55   : > { %v604_v42 = vsel %vm524_vm2, %v601_v19, %v603_v31  ;;  %v2724_v56 = vpack.i.bf16 %v3314_v28, %v3317_v29  ;;  %v2729_v11 = vpack.i.bf16 %v3336_v39, %v3348_v48  ;;  %v2734_v32 = vpack.i.bf16 %v3374_v5, %v3362_v57  ;;  %2518 = vmatprep.subr.bf16.mxu1 %v3199_v38  ;;  %v4617_v19 = vld [vmem:[#allocation11_spill] sm:$0xff] }
  0x56   : > { %v3743_v63 = vpack.i.bf16 %v604_v42, %v602_v4  ;;  %v2739_v6 = vpack.i.bf16 %v3389_v12, %v3384_v10  ;;  %v2744_v45 = vpack.i.bf16 %v3404_v26, %v3407_v27  ;;  %v2749_v54 = vpack.i.bf16 %v3430_v58, %v3433_v59  ;;  %2481 = vmatpush3.bf16.msra.mxu0 %v3199_v38 }
  0x57   : > { %2685 = vrot.lane.b32.xlu1 %v3703_v61, %s3228_s21  ;;  %2690 = vrot.lane.b32.xlu0 %v3709_v52, %s3228_s21  ;;  %vm1616_vm11 = vcmask 261120   ;;  %vm1685_vm12 = vcmask 293888  }
  0x58   : > { %2521 = vmatpush3.bf16.msra.mxu1 %v3199_v38  ;;  %2482 = vmatprep.subr.bf16.mxu0 %v3200_v15  ;;  %v4623_v38 = vld [vmem:[#allocation16_spill] sm:$0xff] }
  0x59   : > { %2519 = vmatprep.subr.bf16.mxu1 %v3200_v15 }
  0x5a   : > { %2483 = vmatpush3.bf16.msra.mxu0 %v3200_v15 }
  0x5b   : > { %2695 = vrot.lane.b32.xlu1 %v3716_v35, %s3228_s21  ;;  %2700 = vrot.lane.b32.xlu0 %v3726_v53, %s3228_s21 }
  0x5c   : > { %2522 = vmatpush3.bf16.msra.mxu1 %v3200_v15  ;;  %2524 = vmatprep.subr.msk.bf16.mxu0 %vm1734_vm3, %v3201_v43 }
  0x5d   : > { %2525 = vmatprep.subr.msk.bf16.mxu1 %vm1734_vm3, %v3201_v43 }
  0x5f   : > { %2705 = vrot.lane.b32.xlu1 %v3731_v24, %s3228_s21  ;;  %2710 = vrot.lane.b32.xlu0 %v3735_v23, %s3228_s21 }
  0x63   : > { %2715 = vrot.lane.b32.xlu1 %v3743_v63, %s3228_s21  ;;  %2720 = vrot.lane.b32.xlu0 %v2719_v20, %s3229_s22  ;;  %v4621_v20 = vld [vmem:[#allocation15_spill] sm:$0xff] }
  0x67   : > { %2725 = vrot.lane.b32.xlu1 %v2724_v56, %s3229_s22  ;;  %2730 = vrot.lane.b32.xlu0 %v2729_v11, %s3229_s22 }
  0x6b   : > { %2735 = vrot.lane.b32.xlu1 %v2734_v32, %s3229_s22  ;;  %2740 = vrot.lane.b32.xlu0 %v2739_v6, %s3229_s22 }
  0x6f   : > { %2745 = vrot.lane.b32.xlu1 %v2744_v45, %s3229_s22  ;;  %2750 = vrot.lane.b32.xlu0 %v2749_v54, %s3229_s22 }
  0x73   : > { %2755 = vrot.lane.b32.xlu1 %v3365_v60, %s3230_s25  ;;  %2760 = vrot.lane.b32.xlu0 %v4615_v50, %s3230_s25  ;;  %v1736_v60 = vsel %vm1734_vm3, %v3201_v43, 0  ;;  %v4624_v43 = vld [vmem:[#allocation17_spill] sm:$0xff] }
  0x74   : > { %2485 = vmatpush3.bf16.msra.mxu0 %v1736_v60  ;;  %2523 = vmatpush3.bf16.msra.mxu1 %v1736_v60 }
  0x77   : > { %2765 = vrot.lane.b32.xlu1 %v3619_v46, %s3231_s28  ;;  %2770 = vrot.lane.b32.xlu0 %v3628_v62, %s3231_s28  ;;  %v4616_v46 = vld [vmem:[#allocation7_spill] sm:$0xff] }
  0x7b   : > { %2775 = vrot.lane.b32.xlu1 %v2724_v56, %s3232_s4  ;;  %2780 = vrot.lane.b32.xlu0 %v2729_v11, %s3232_s4 }
  0x7f   : > { %2785 = vrot.lane.b32.xlu1 %v4615_v50, %s3233_s5  ;;  %2790 = vrot.lane.b32.xlu0 %v4616_v46, %s3233_s5 }
  0x83   : > { %2795 = vrot.lane.b32.xlu1 %v3628_v62, %s3234_s6  ;;  %2800 = vrot.lane.b32.xlu0 %v3642_v3, %s3234_s6 }
  0x87   : > { %2805 = vrot.lane.b32.xlu1 %v4616_v46, %s3230_s25  ;;  %2810 = vrot.lane.b32.xlu0 %v4617_v19, %s3230_s25  ;;  %v2934_v46 = vpack.i.bf16 %v3464_v33, %v3467_v34 }
  0x89   : > { %v3805_v25 = vpop.permute.xlu0 %2560 }
  0x8b   : > { %2815 = vrot.lane.b32.xlu1 %v3642_v3, %s3231_s28  ;;  %2820 = vrot.lane.b32.xlu0 %v3654_v16, %s3231_s28  ;;  %v4618_v3 = vld [vmem:[#allocation14_spill] sm:$0xff] }
  0x8f   : > { %2825 = vrot.lane.b32.xlu1 %v2734_v32, %s3232_s4  ;;  %v3808_v62 = vpop.permute.xlu1 %2570  ;;  %2830 = vrot.lane.b32.xlu0 %v2739_v6, %s3232_s4 }
  0x91   : > { %v3811_v30 = vpop.permute.xlu0 %2565 }
  0x93   : > { %2835 = vrot.lane.b32.xlu1 %v4617_v19, %s3233_s5  ;;  %v3815_v31 = vpop.permute.xlu1 %2575  ;;  %2840 = vrot.lane.b32.xlu0 %v4618_v3, %s3233_s5 }
  0x97   : > { %2845 = vrot.lane.b32.xlu1 %v3654_v16, %s3234_s6  ;;  %v3821_v4 = vpop.permute.xlu0 %2580  ;;  %2850 = vrot.lane.b32.xlu0 %v3662_v21, %s3234_s6 }
  0x98   : > { %4619 = vst [vmem:[#allocation5_spill] sm:$0xff] %v3821_v4 }
  0x99   : > { %v3825_v42 = vpop.permute.xlu1 %2585 }
  0x9a   : > { %4620 = vst [vmem:[#allocation7_spill] sm:$0xff] %v3825_v42 }
  0x9b   : > { %2855 = vrot.lane.b32.xlu1 %v4618_v3, %s3230_s25  ;;  %2860 = vrot.lane.b32.xlu0 %v4621_v20, %s3230_s25  ;;  %v3831_v56 = vpop.permute.xlu0 %2590 }
  0x9c   : > { %4622 = vst [vmem:[#allocation11_spill] sm:$0xff] %v3831_v56 }
  0x9f   : > { %2865 = vrot.lane.b32.xlu1 %v3662_v21, %s3231_s28  ;;  %v2596_v11 = vpop.permute.xlu1 %2595  ;;  %2870 = vrot.lane.b32.xlu0 %v3666_v49, %s3231_s28 }
  0xa0   : > { %v2597_v26 = vunpack.i.l.bf16 %v2596_v11 }
  0xa1   : > { %v2601_v16 = vpop.permute.xlu0 %2600 }
  0xa2   : > { %v2603_v10 = vunpack.i.h.bf16 %v2601_v16  ;;  %v2602_v12 = vunpack.i.l.bf16 %v2601_v16  ;;  %v3909_v16 = vpack.i.bf16 %v3504_v40, %v3507_v41 }
  0xa3   : > { %2875 = vrot.lane.b32.xlu1 %v2744_v45, %s3232_s4  ;;  %2880 = vrot.lane.b32.xlu0 %v2749_v54, %s3232_s4  ;;  %v3839_v32 = vpop.permute.xlu1 %2605  ;;  %v2904_v45 = vpack.i.bf16 %v3444_v8, %v3447_v9 }
  0xa4   : > { %v2608_v57 = vunpack.i.h.bf16 %v3839_v32 }
  0xa7   : > { %2885 = vrot.lane.b32.xlu1 %v4621_v20, %s3233_s5  ;;  %v3843_v6 = vpop.permute.xlu0 %2610  ;;  %2890 = vrot.lane.b32.xlu0 %v4623_v38, %s3233_s5 }
  0xa8   : > { %v2612_v4 = vunpack.i.l.bf16 %v3843_v6 }
  0xa9   : > { %v3847_v21 = vpop.permute.xlu1 %2615 }
  0xab   : > { %2895 = vrot.lane.b32.xlu1 %v3666_v49, %s3234_s6  ;;  %2900 = vrot.lane.b32.xlu0 %v3682_v13, %s3234_s6 }
  0xad   : > { %v3855_v54 = vpop.permute.xlu0 %2620 }
  0xaf   : > { %2905 = vrot.lane.b32.xlu1 %v2904_v45, %s3229_s22  ;;  %v3858_v15 = vpop.permute.xlu1 %2625  ;;  %2910 = vrot.lane.b32.xlu0 %v4623_v38, %s3230_s25  ;;  %v4626_v38 = vld [vmem:[#allocation18_spill] sm:$0xff] }
  0xb1   : > { %v3862_v50 = vpop.permute.xlu0 %2630 }
  0xb3   : > { %2915 = vrot.lane.b32.xlu1 %v4624_v43, %s3230_s25  ;;  %2920 = vrot.lane.b32.xlu0 %v3682_v13, %s3231_s28 }
  0xb5   : > { %v3868_v49 = vpop.permute.xlu1 %2635  ;;  %v3870_v60 = vpop.permute.xlu0 %2640 }
  0xb7   : > { %2925 = vrot.lane.b32.xlu1 %v3689_v7, %s3231_s28  ;;  %2930 = vrot.lane.b32.xlu0 %v2904_v45, %s3232_s4  ;;  %v2598_v45 = vunpack.i.h.bf16 %v2596_v11  ;;  %v1400_v11 = vsel %vm1385_vm4, %v3433_v59, %v2597_v26  ;;  %v2613_v59 = vunpack.i.h.bf16 %v3843_v6 }
  0xb9   : > { %v3877_v19 = vpop.permute.xlu1 %2645  ;;  %v3879_v3 = vpop.permute.xlu0 %2650 }
  0xbb   : > { %2935 = vrot.lane.b32.xlu1 %v2934_v46, %s3232_s4  ;;  %2940 = vrot.lane.b32.xlu0 %v4624_v43, %s3233_s5  ;;  %v3900_v43 = vpack.i.bf16 %v3487_v14, %v3490_v18 }
  0xbd   : > { %v3884_v13 = vpop.permute.xlu1 %2655  ;;  %v3886_v20 = vpop.permute.xlu0 %2660 }
  0xbe   : > { %4625 = vst [vmem:[#allocation14_spill] sm:$0xff] %v3886_v20 }
  0xbf   : > { %2945 = vrot.lane.b32.xlu1 %v4626_v38, %s3233_s5  ;;  %2950 = vrot.lane.b32.xlu0 %v3689_v7, %s3234_s6  ;;  %v1401_v7 = vsel %vm1385_vm4, %v3430_v58, %v2598_v45  ;;  %v1402_v58 = vsel %vm1385_vm4, %v3447_v9, %v2602_v12  ;;  %v2617_v12 = vunpack.i.l.bf16 %v3847_v21 }
  0xc1   : > { %v3892_v27 = vpop.permute.xlu1 %2665  ;;  %v3894_v56 = vpop.permute.xlu0 %2670 }
  0xc2   : > { %4627 = vst [vmem:[#allocation15_spill] sm:$0xff] %v3892_v27  ;;  %4628 = vst [vmem:[#allocation16_spill] sm:$0xff] %v3894_v56  ;;  %v2607_v27 = vunpack.i.l.bf16 %v3839_v32 }
  0xc3   : > { %2955 = vrot.lane.b32.xlu1 %v3703_v61, %s3234_s6  ;;  %2960 = vrot.lane.b32.xlu0 %v2934_v46, %s3229_s22  ;;  %v1403_v46 = vsel %vm1385_vm4, %v3444_v8, %v2603_v10  ;;  %v2618_v10 = vunpack.i.h.bf16 %v3847_v21  ;;  %v2622_v21 = vunpack.i.l.bf16 %v3855_v54 }
  0xc4   : > { %v1404_v6 = vsel %vm1385_vm4, %v3467_v34, %v2607_v27 }
  0xc5   : > { %v2676_v56 = vpop.permute.xlu1 %2675  ;;  %v2681_v42 = vpop.permute.xlu0 %2680  ;;  %v1409_v34 = vsel %vm1385_vm4, %v3504_v40, %v2618_v10 }
  0xc6   : > { %v2678_v5 = vunpack.i.h.bf16 %v2676_v56  ;;  %v2677_v20 = vunpack.i.l.bf16 %v2676_v56  ;;  %v2683_v45 = vunpack.i.h.bf16 %v2681_v42  ;;  %v2682_v26 = vunpack.i.l.bf16 %v2681_v42 }
  0xc7   : > { %2965 = vrot.lane.b32.xlu1 %v3900_v43, %s3229_s22  ;;  %2970 = vrot.lane.b32.xlu0 %v4626_v38, %s3230_s25 }
  0xc8   : > { %v3922_v32 = vsel %vm1418_vm5, %v1401_v7, %v2678_v5  ;;  %v3925_v56 = vsel %vm1418_vm5, %v1400_v11, %v2677_v20  ;;  %v3932_v8 = vsel %vm1418_vm5, %v1402_v58, %v2682_v26  ;;  %v3935_v9 = vsel %vm1418_vm5, %v1403_v46, %v2683_v45  ;;  %v4630_v26 = vld [vmem:[#allocation19_spill] sm:$0xff] }
  0xc9   : > { %4629 = vst [vmem:[#allocation17_spill] sm:$0xff] %v3925_v56  ;;  %v2686_v42 = vpop.permute.xlu1 %2685  ;;  %v1405_v5 = vsel %vm1385_vm4, %v3464_v33, %v2608_v57  ;;  %v2691_v38 = vpop.permute.xlu0 %2690  ;;  %v2623_v11 = vunpack.i.h.bf16 %v3855_v54  ;;  %v1407_v46 = vsel %vm1385_vm4, %v3487_v14, %v2613_v59  ;;  %v1406_v57 = vsel %vm1385_vm4, %v3490_v18, %v2612_v4 }
  0xca   : > { %v2688_v20 = vunpack.i.h.bf16 %v2686_v42  ;;  %v2687_v7 = vunpack.i.l.bf16 %v2686_v42  ;;  %v2693_v56 = vunpack.i.h.bf16 %v2691_v38  ;;  %v2692_v58 = vunpack.i.l.bf16 %v2691_v38 }
  0xcb   : > { %2975 = vrot.lane.b32.xlu1 %v4630_v26, %s3230_s25  ;;  %2980 = vrot.lane.b32.xlu0 %v3703_v61, %s3231_s28  ;;  %v1408_v54 = vsel %vm1385_vm4, %v3507_v41, %v2617_v12  ;;  %v2628_v45 = vunpack.i.h.bf16 %v3858_v15  ;;  %v2627_v59 = vunpack.i.l.bf16 %v3858_v15  ;;  %v1411_v40 = vsel %vm1385_vm4, %v3534_v51, %v2623_v11 }
  0xcc   : > { %v3950_v27 = vsel %vm1418_vm5, %v1405_v5, %v2688_v20  ;;  %v3953_v33 = vsel %vm1418_vm5, %v1404_v6, %v2687_v7  ;;  %v3962_v14 = vsel %vm1418_vm5, %v1406_v57, %v2692_v58  ;;  %v3965_v18 = vsel %vm1418_vm5, %v1407_v46, %v2693_v56 }
  0xcd   : > { %v2696_v4 = vpop.permute.xlu1 %2695  ;;  %v2701_v61 = vpop.permute.xlu0 %2700  ;;  %v1410_v41 = vsel %vm1385_vm4, %v3525_v0, %v2622_v21  ;;  %v2633_v56 = vunpack.i.h.bf16 %v3862_v50  ;;  %v2632_v6 = vunpack.i.l.bf16 %v3862_v50  ;;  %v1413_v21 = vsel %vm1385_vm4, %v3544_v1, %v2628_v45 }
  0xce   : > { %v2698_v42 = vunpack.i.h.bf16 %v2696_v4  ;;  %v2697_v5 = vunpack.i.l.bf16 %v2696_v4  ;;  %v2703_v10 = vunpack.i.h.bf16 %v2701_v61  ;;  %v2702_v12 = vunpack.i.l.bf16 %v2701_v61 }
  0xcf   : > { %2985 = vrot.lane.b32.xlu1 %v3709_v52, %s3231_s28  ;;  %2990 = vrot.lane.b32.xlu0 %v3900_v43, %s3232_s4  ;;  %v1412_v50 = vsel %vm1385_vm4, %v3547_v55, %v2627_v59  ;;  %v2637_v43 = vunpack.i.l.bf16 %v3868_v49  ;;  %v1414_v45 = vsel %vm1385_vm4, %v3567_v22, %v2632_v6 }
  0xd0   : > { %v3978_v15 = vsel %vm1418_vm5, %v1409_v34, %v2698_v42  ;;  %v3981_v20 = vsel %vm1418_vm5, %v1408_v54, %v2697_v5  ;;  %v3986_v7 = vsel %vm1418_vm5, %v1410_v41, %v2702_v12  ;;  %v3989_v38 = vsel %vm1418_vm5, %v1411_v40, %v2703_v10 }
  0xd1   : > { %4631 = vst [vmem:[#allocation18_spill] sm:$0xff] %v3986_v7  ;;  %4632 = vst [vmem:[#allocation19_spill] sm:$0xff] %v3989_v38  ;;  %v2706_v11 = vpop.permute.xlu1 %2705  ;;  %v2711_v57 = vpop.permute.xlu0 %2710  ;;  %v2638_v34 = vunpack.i.h.bf16 %v3868_v49  ;;  %v1415_v42 = vsel %vm1385_vm4, %v3564_v2, %v2633_v56  ;;  %v1416_v6 = vsel %vm1385_vm4, %v3594_v47, %v2637_v43  ;;  %v242_v43 = vld [vmem:[%s3292_s19 + $0xf0] sm:$0xff] }
  0xd2   : > { %v2708_v58 = vunpack.i.h.bf16 %v2706_v11  ;;  %v2707_v46 = vunpack.i.l.bf16 %v2706_v11  ;;  %v2713_v54 = vunpack.i.h.bf16 %v2711_v57  ;;  %v2712_v4 = vunpack.i.l.bf16 %v2711_v57 }
  0xd3   : > { %2995 = vrot.lane.b32.xlu1 %v3909_v16, %s3232_s4  ;;  %3000 = vrot.lane.b32.xlu0 %v4630_v26, %s3233_s5  ;;  %v1417_v56 = vsel %vm1385_vm4, %v3591_v17, %v2638_v34  ;;  %v4637_v26 = vld [vmem:[#allocation20_spill] sm:$0xff] }
  0xd4   : > { %v4004_v59 = vsel %vm1418_vm5, %v1413_v21, %v2708_v58  ;;  %v4007_v5 = vsel %vm1418_vm5, %v1412_v50, %v2707_v46  ;;  %v4012_v49 = vsel %vm1418_vm5, %v1414_v45, %v2712_v4  ;;  %v4015_v61 = vsel %vm1418_vm5, %v1415_v42, %v2713_v54  ;;  %v243_v54 = vld [vmem:[%s3292_s19 + $0xf8] sm:$0xff] }
  0xd5   : > { %4633 = vst [vmem:[#allocation25_spill] sm:$0xff] %v4004_v59  ;;  %4634 = vst [vmem:[#allocation26_spill] sm:$0xff] %v4007_v5  ;;  %v2716_v40 = vpop.permute.xlu1 %2715  ;;  %v4017_v12 = vpop.permute.xlu0 %2720  ;;  %v3024_v46 = vpack.i.bf16 %v3534_v51, %v3525_v0  ;;  %v4640_v0 = vld [vmem:[#allocation21_spill] sm:$0xff]  ;;  %v325_v51 = vrot.slane %v242_v43, 7  ;;  %v2563_v45 = vunpack.i.h.bf16 %v3805_v25  ;;  %v2643_v43 = vunpack.i.h.bf16 %v3870_v60 }
  0xd6   : > { %4635 = vst [vmem:[#allocation27_spill] sm:$0xff] %v4012_v49  ;;  %4636 = vst [vmem:[#allocation28_spill] sm:$0xff] %v4015_v61  ;;  %v2718_v41 = vunpack.i.h.bf16 %v2716_v40  ;;  %v2717_v10 = vunpack.i.l.bf16 %v2716_v40  ;;  %v2722_v61 = vunpack.i.l.bf16 %v4017_v12 }
  0xd7   : > { %3005 = vrot.lane.b32.xlu1 %v4637_v26, %s3233_s5  ;;  %3010 = vrot.lane.b32.xlu0 %v3709_v52, %s3234_s6 }
  0xd8   : > { %v4026_v11 = vsel %vm1418_vm5, %v1417_v56, %v2718_v41  ;;  %v4029_v21 = vsel %vm1418_vm5, %v1416_v6, %v2717_v10  ;;  %v2562_v41 = vunpack.i.l.bf16 %v3805_v25  ;;  %v4070_v10 = vpack.i.bf16 %v3544_v1, %v3547_v55 }
  0xd9   : > { %4638 = vst [vmem:[#allocation20_spill] sm:$0xff] %v4026_v11  ;;  %4639 = vst [vmem:[#allocation29_spill] sm:$0xff] %v4029_v21  ;;  %v4033_v50 = vpop.permute.xlu1 %2725  ;;  %v4035_v58 = vpop.permute.xlu0 %2730  ;;  %v4081_v25 = vsel %vm277_vm0, 0.0, %v325_v51  ;;  %v2568_v6 = vunpack.i.h.bf16 %v3811_v30  ;;  %v2642_v1 = vunpack.i.l.bf16 %v3870_v60 }
  0xda   : > { %v2727_v49 = vunpack.i.l.bf16 %v4033_v50 }
  0xdb   : > { %3015 = vrot.lane.b32.xlu1 %v3716_v35, %s3234_s6  ;;  %3020 = vrot.lane.b32.xlu0 %v3909_v16, %s3229_s22  ;;  %v326_v16 = vrot.slane %v243_v54, 7  ;;  %v2647_v54 = vunpack.i.l.bf16 %v3877_v19 }
  0xdd   : > { %v4043_v57 = vpop.permute.xlu1 %2735  ;;  %v4045_v34 = vpop.permute.xlu0 %2740  ;;  %v4078_v56 = vsel %vm277_vm0, %v325_v51, %v326_v16  ;;  %v4642_v51 = vld [vmem:[#allocation3_spill] sm:$0xff]  ;;  %v4098_v60 = vsel %vm277_vm0, %v326_v16, 0.0 }
  0xde   : > { %v1386_v11 = vsel %vm1385_vm4, %v4642_v51, %v2562_v41 }
  0xdf   : > { %3025 = vrot.lane.b32.xlu1 %v3024_v46, %s3229_s22  ;;  %3030 = vrot.lane.b32.xlu0 %v4637_v26, %s3230_s25  ;;  %v2567_v26 = vunpack.i.l.bf16 %v3811_v30  ;;  %v2723_v30 = vunpack.i.h.bf16 %v4017_v12  ;;  %v1389_v12 = vsel %vm1385_vm4, %v3327_v36, %v2568_v6  ;;  %v1419_v59 = vsel %vm1418_vm5, %v1386_v11, %v2642_v1  ;;  %v4643_v11 = vld [vmem:[#allocation22_spill] sm:$0xff] }
  0xe0   : > { %v1452_v36 = vsel %vm1451_vm6, %v1419_v59, %v2722_v61 }
  0xe1   : > { %v4050_v52 = vpop.permute.xlu1 %2745  ;;  %v4054_v4 = vpop.permute.xlu0 %2750  ;;  %v1388_v5 = vsel %vm1385_vm4, %v3330_v37, %v2567_v26 }
  0xe3   : > { %3035 = vrot.lane.b32.xlu1 %v4640_v0, %s3230_s25  ;;  %3040 = vrot.lane.b32.xlu0 %v3716_v35, %s3231_s28  ;;  %v4075_v35 = vpack.i.bf16 %v3564_v2, %v3567_v22  ;;  %v2648_v22 = vunpack.i.h.bf16 %v3877_v19 }
  0xe5   : > { %v4060_v42 = vpop.permute.xlu1 %2755  ;;  %v4063_v40 = vpop.permute.xlu0 %2760 }
  0xe6   : > { %v2758_v19 = vunpack.i.h.bf16 %v4060_v42  ;;  %v2757_v41 = vunpack.i.l.bf16 %v4060_v42  ;;  %v2763_v37 = vunpack.i.h.bf16 %v4063_v40  ;;  %v2762_v26 = vunpack.i.l.bf16 %v4063_v40 }
  0xe7   : > { %3045 = vrot.lane.b32.xlu1 %v3726_v53, %s3231_s28  ;;  %3050 = vrot.lane.b32.xlu0 %v3024_v46, %s3232_s4  ;;  %v4641_v46 = vld [vmem:[#allocation2_spill] sm:$0xff] }
  0xe8   : > { %v1387_v2 = vsel %vm1385_vm4, %v4641_v46, %v2563_v45  ;;  %v2728_v45 = vunpack.i.h.bf16 %v4033_v50  ;;  %v1421_v50 = vsel %vm1418_vm5, %v1388_v5, %v2647_v54  ;;  %v1485_v40 = vsel %vm1484_vm7, %v1452_v36, %v2757_v41 }
  0xe9   : > { %v2766_v55 = vpop.permute.xlu1 %2765  ;;  %v2771_v21 = vpop.permute.xlu0 %2770  ;;  %v1420_v16 = vsel %vm1418_vm5, %v1387_v2, %v2643_v43  ;;  %v1454_v5 = vsel %vm1451_vm6, %v1421_v50, %v2727_v49 }
  0xea   : > { %v1453_v6 = vsel %vm1451_vm6, %v1420_v16, %v2723_v30  ;;  %v2768_v1 = vunpack.i.h.bf16 %v2766_v55  ;;  %v2767_v2 = vunpack.i.l.bf16 %v2766_v55  ;;  %v2773_v59 = vunpack.i.h.bf16 %v2771_v21 }
  0xeb   : > { %3055 = vrot.lane.b32.xlu1 %v4070_v10, %s3232_s4  ;;  %3060 = vrot.lane.b32.xlu0 %v4640_v0, %s3233_s5  ;;  %v1422_v0 = vsel %vm1418_vm5, %v1389_v12, %v2648_v22  ;;  %v2772_v61 = vunpack.i.l.bf16 %v2771_v21  ;;  %v1486_v30 = vsel %vm1484_vm7, %v1453_v6, %v2758_v19 }
  0xec   : > { %v1455_v43 = vsel %vm1451_vm6, %v1422_v0, %v2728_v45  ;;  %v1487_v45 = vsel %vm1484_vm7, %v1454_v5, %v2762_v26 }
  0xed   : > { %v2776_v38 = vpop.permute.xlu1 %2775  ;;  %v2781_v7 = vpop.permute.xlu0 %2780  ;;  %v1488_v55 = vsel %vm1484_vm7, %v1455_v43, %v2763_v37 }
  0xee   : > { %v2778_v42 = vunpack.i.h.bf16 %v2776_v38  ;;  %v2777_v22 = vunpack.i.l.bf16 %v2776_v38  ;;  %v2783_v12 = vunpack.i.h.bf16 %v2781_v7  ;;  %v2782_v16 = vunpack.i.l.bf16 %v2781_v7 }
  0xef   : > { %3065 = vrot.lane.b32.xlu1 %v4643_v11, %s3233_s5  ;;  %3070 = vrot.lane.b32.xlu0 %v3726_v53, %s3234_s6  ;;  %v1518_v53 = vsel %vm1517_vm8, %v1485_v40, %v2767_v2  ;;  %v1519_v38 = vsel %vm1517_vm8, %v1486_v30, %v2768_v1  ;;  %v1520_v7 = vsel %vm1517_vm8, %v1487_v45, %v2772_v61 }
  0xf0   : > { %v1521_v19 = vsel %vm1517_vm8, %v1488_v55, %v2773_v59  ;;  %v1551_v36 = vsel %vm1550_vm9, %v1518_v53, %v2777_v22  ;;  %v1552_v6 = vsel %vm1550_vm9, %v1519_v38, %v2778_v42  ;;  %v1553_v26 = vsel %vm1550_vm9, %v1520_v7, %v2782_v16 }
  0xf1   : > { %v2786_v54 = vpop.permute.xlu1 %2785  ;;  %v2791_v49 = vpop.permute.xlu0 %2790  ;;  %v1554_v5 = vsel %vm1550_vm9, %v1521_v19, %v2783_v12  ;;  %v2573_v55 = vunpack.i.h.bf16 %v3808_v62  ;;  %v4159_v53 = vpack.i.bf16 %v3591_v17, %v3594_v47  ;;  %v2572_v38 = vunpack.i.l.bf16 %v3808_v62 }
  0xf2   : > { %v2788_v50 = vunpack.i.h.bf16 %v2786_v54  ;;  %v2787_v0 = vunpack.i.l.bf16 %v2786_v54  ;;  %v2793_v21 = vunpack.i.h.bf16 %v2791_v49  ;;  %v2792_v41 = vunpack.i.l.bf16 %v2791_v49 }
  0xf3   : > { %3075 = vrot.lane.b32.xlu1 %v3731_v24, %s3234_s6  ;;  %3080 = vrot.lane.b32.xlu0 %v4070_v10, %s3229_s22  ;;  %v4645_v17 = vrot.slane %v4078_v56, 1  ;;  %v4646_v47 = vrot.slane %v4081_v25, 1  ;;  %v2578_v7 = vunpack.i.h.bf16 %v3815_v31  ;;  %v2577_v19 = vunpack.i.l.bf16 %v3815_v31 }
  0xf4   : > { %v1584_v10 = vsel %vm1583_vm10, %v1551_v36, %v2787_v0  ;;  %v1585_v59 = vsel %vm1583_vm10, %v1552_v6, %v2788_v50  ;;  %v1586_v61 = vsel %vm1583_vm10, %v1553_v26, %v2792_v41  ;;  %v1587_v42 = vsel %vm1583_vm10, %v1554_v5, %v2793_v21  ;;  %v4644_v21 = vld [vmem:[#allocation24_spill] sm:$0xff] }
  0xf5   : > { %v2796_v37 = vpop.permute.xlu1 %2795  ;;  %v2801_v2 = vpop.permute.xlu0 %2800  ;;  %v4171_v41 = vpack.i.bf16 %v4078_v56, %v4081_v25  ;;  %v4178_v62 = vsel %vm443_vm1, %v4646_v47, %v4645_v17  ;;  %v2653_v36 = vunpack.i.h.bf16 %v3879_v3  ;;  %v2658_v26 = vunpack.i.h.bf16 %v3884_v13 }
  0xf6   : > { %v2798_v43 = vunpack.i.h.bf16 %v2796_v37  ;;  %v2797_v1 = vunpack.i.l.bf16 %v2796_v37  ;;  %v2803_v54 = vunpack.i.h.bf16 %v2801_v2  ;;  %v2802_v40 = vunpack.i.l.bf16 %v2801_v2 }
  0xf7   : > { %3085 = vrot.lane.b32.xlu1 %v4075_v35, %s3229_s22  ;;  %3090 = vrot.lane.b32.xlu0 %v4643_v11, %s3230_s25  ;;  %v610_v11 = vrot.slane %v4098_v60, 1  ;;  %v1391_v37 = vsel %vm1385_vm4, %v3314_v28, %v2573_v55  ;;  %v2657_v5 = vunpack.i.l.bf16 %v3884_v13  ;;  %v1390_v31 = vsel %vm1385_vm4, %v3317_v29, %v2572_v38 }
  0xf8   : > { %v1617_v22 = vsel %vm1616_vm11, %v1584_v10, %v2797_v1  ;;  %v1618_v30 = vsel %vm1616_vm11, %v1585_v59, %v2798_v43  ;;  %v1619_v12 = vsel %vm1616_vm11, %v1586_v61, %v2802_v40  ;;  %v1620_v16 = vsel %vm1616_vm11, %v1587_v42, %v2803_v54 }
  0xf9   : > { %v2806_v49 = vpop.permute.xlu1 %2805  ;;  %v1649_v45 = vpack.c.bf16 %v1618_v30, %v1617_v22  ;;  %v1650_v50 = vpack.c.bf16 %v1620_v16, %v1619_v12  ;;  %v4155_v0 = vpop.permute.xlu0 %2810  ;;  %v4647_v1 = vmov %v4645_v17  ;;  %v2733_v54 = vunpack.i.h.bf16 %v4035_v58 }
  0xfa   : > { %v4191_v2 = vsel %vm443_vm1, %v4647_v1, %v610_v11  ;;  %v612_v28 = vrot.slane %v4081_v25, 2  ;;  %v2738_v13 = vunpack.i.h.bf16 %v4043_v57  ;;  %v2737_v40 = vunpack.i.l.bf16 %v4043_v57 }
  0xfb   : > { %3095 = vrot.lane.b32.xlu1 %v4644_v21, %s3230_s25  ;;  %2486 = vmatprep.mubr.msk.bf16.mxu0 %vm1685_vm12, %v1649_v45  ;;  %v613_v10 = vrot.slane %v4078_v56, 2  ;;  %v615_v29 = vrot.slane %v4098_v60, 2  ;;  %v1393_v59 = vsel %vm1385_vm4, %v3336_v39, %v2578_v7  ;;  %v1424_v61 = vsel %vm1418_vm5, %v1391_v37, %v2653_v36  ;;  %v4652_v56 = vld [vmem:[#allocation15_spill] sm:$0xff] }
  0xfc   : > { %3100 = vrot.lane.b32.xlu0 %v3731_v24, %s3231_s28  ;;  %2487 = vmatmul.mubr.msk.bf16.vlgmr.msra.gmra.mrb[0].mxu0 %vm1685_vm12, %v1650_v50  ;;  %v2652_v24 = vunpack.i.l.bf16 %v3879_v3  ;;  %v2732_v3 = vunpack.i.l.bf16 %v4035_v58  ;;  %v1392_v58 = vsel %vm1385_vm4, %v3348_v48, %v2577_v19  ;;  %v1426_v57 = vsel %vm1418_vm5, %v1393_v59, %v2658_v26 }
  0xfd   : > { %v2816_v6 = vpop.permute.xlu1 %2815  ;;  %v2821_v43 = vpop.permute.xlu0 %2820  ;;  %v1425_v30 = vsel %vm1418_vm5, %v1392_v58, %v2657_v5  ;;  %v2807_v12 = vunpack.i.l.bf16 %v2806_v49  ;;  %v1457_v55 = vsel %vm1451_vm6, %v1424_v61, %v2733_v54  ;;  %v2813_v39 = vunpack.i.h.bf16 %v4155_v0 }
  0xfe   : > { %v1423_v42 = vsel %vm1418_vm5, %v1390_v31, %v2652_v24  ;;  %v2812_v48 = vunpack.i.l.bf16 %v4155_v0  ;;  %v1458_v50 = vsel %vm1451_vm6, %v1425_v30, %v2737_v40  ;;  %v1459_v11 = vsel %vm1451_vm6, %v1426_v57, %v2738_v13 }
  0xff   : > { %3105 = vrot.lane.b32.xlu1 %v3735_v23, %s3231_s28  ;;  %v1456_v45 = vsel %vm1451_vm6, %v1423_v42, %v2732_v3  ;;  %v2818_v38 = vunpack.i.h.bf16 %v2816_v6  ;;  %v2817_v17 = vunpack.i.l.bf16 %v2816_v6  ;;  %v2822_v47 = vunpack.i.l.bf16 %v2821_v43 }
 0x100   : > { %3110 = vrot.lane.b32.xlu0 %v4075_v35, %s3232_s4  ;;  %v2808_v35 = vunpack.i.h.bf16 %v2806_v49  ;;  %v2823_v49 = vunpack.i.h.bf16 %v2821_v43  ;;  %v1489_v24 = vsel %vm1484_vm7, %v1456_v45, %v2807_v12  ;;  %v1492_v1 = vsel %vm1484_vm7, %v1459_v11, %v2813_v39 }
 0x101   : > { %v2826_v22 = vpop.permute.xlu1 %2825  ;;  %v2831_v16 = vpop.permute.xlu0 %2830  ;;  %v1491_v31 = vsel %vm1484_vm7, %v1458_v50, %v2812_v48 }
 0x102   : > { %v2828_v7 = vunpack.i.h.bf16 %v2826_v22  ;;  %v2827_v19 = vunpack.i.l.bf16 %v2826_v22  ;;  %v1490_v0 = vsel %vm1484_vm7, %v1457_v55, %v2808_v35  ;;  %v2833_v37 = vunpack.i.h.bf16 %v2831_v16 }
 0x103   : > { %3115 = vrot.lane.b32.xlu1 %v4159_v53, %s3232_s4  ;;  %v2832_v26 = vunpack.i.l.bf16 %v2831_v16  ;;  %v1523_v43 = vsel %vm1517_vm8, %v1490_v0, %v2818_v38  ;;  %v1524_v40 = vsel %vm1517_vm8, %v1491_v31, %v2822_v47  ;;  %v1525_v59 = vsel %vm1517_vm8, %v1492_v1, %v2823_v49 }
 0x104   : > { %3120 = vrot.lane.b32.xlu0 %v4644_v21, %s3233_s5  ;;  %v1522_v21 = vsel %vm1517_vm8, %v1489_v24, %v2817_v17  ;;  %v1556_v61 = vsel %vm1550_vm9, %v1523_v43, %v2828_v7  ;;  %v1558_v57 = vsel %vm1550_vm9, %v1525_v59, %v2833_v37  ;;  %v4648_v7 = vld [vmem:[#allocation5_spill] sm:$0xff]  ;;  %v614_v37 = vsel %vm524_vm2, %v612_v28, %v613_v10  ;;  %v4654_v59 = vld [vmem:[#allocation10_spill] sm:$0xff] }
 0x105   : > { %v2836_v36 = vpop.permute.xlu1 %2835  ;;  %v2841_v5 = vpop.permute.xlu0 %2840  ;;  %v1555_v58 = vsel %vm1550_vm9, %v1522_v21, %v2827_v19  ;;  %v1557_v22 = vsel %vm1550_vm9, %v1524_v40, %v2832_v26  ;;  %v2583_v19 = vunpack.i.h.bf16 %v4648_v7  ;;  %v2582_v0 = vunpack.i.l.bf16 %v4648_v7 }
 0x106   : > { %v2838_v6 = vunpack.i.h.bf16 %v2836_v36  ;;  %v2837_v54 = vunpack.i.l.bf16 %v2836_v36  ;;  %v2843_v3 = vunpack.i.h.bf16 %v2841_v5  ;;  %v2842_v13 = vunpack.i.l.bf16 %v2841_v5  ;;  %v4649_v5 = vld [vmem:[#allocation7_spill] sm:$0xff] }
 0x107   : > { %3125 = vrot.lane.b32.xlu1 %v3614_v44, %s3233_s5  ;;  %v616_v26 = vsel %vm524_vm2, %v613_v10, %v615_v29  ;;  %v2588_v1 = vunpack.i.h.bf16 %v4649_v5  ;;  %v2667_v10 = vunpack.i.l.bf16 %v4652_v56  ;;  %v3174_v40 = vpack.i.bf16 %v4641_v46, %v4642_v51 }
 0x108   : > { %3130 = vrot.lane.b32.xlu0 %v3735_v23, %s3234_s6  ;;  %v1588_v16 = vsel %vm1583_vm10, %v1555_v58, %v2837_v54  ;;  %v1589_v23 = vsel %vm1583_vm10, %v1556_v61, %v2838_v6  ;;  %v1590_v39 = vsel %vm1583_vm10, %v1557_v22, %v2842_v13  ;;  %v1591_v48 = vsel %vm1583_vm10, %v1558_v57, %v2843_v3  ;;  %v4651_v6 = vld [vmem:[#allocation8_spill] sm:$0xff]  ;;  %v4655_v22 = vld [vmem:[#allocation9_spill] sm:$0xff] }
 0x109   : > { %v2846_v42 = vpop.permute.xlu1 %2845  ;;  %v2851_v12 = vpop.permute.xlu0 %2850  ;;  %v1395_v60 = vsel %vm1385_vm4, %v4651_v6, %v2583_v19  ;;  %v2668_v54 = vunpack.i.h.bf16 %v4652_v56  ;;  %v4280_v21 = vpack.i.bf16 %v616_v26, %v614_v37  ;;  %v2743_v3 = vunpack.i.h.bf16 %v4045_v34 }
 0x10a   : > { %v2848_v30 = vunpack.i.h.bf16 %v2846_v42  ;;  %v2847_v35 = vunpack.i.l.bf16 %v2846_v42  ;;  %v2853_v45 = vunpack.i.h.bf16 %v2851_v12  ;;  %v2852_v55 = vunpack.i.l.bf16 %v2851_v12 }
 0x10b   : > { %3135 = vrot.lane.b32.xlu1 %v3743_v63, %s3234_s6  ;;  %v2742_v13 = vunpack.i.l.bf16 %v4045_v34  ;;  %v1397_v58 = vsel %vm1385_vm4, %v4654_v59, %v2588_v1  ;;  %v2748_v61 = vunpack.i.h.bf16 %v4050_v52  ;;  %v2747_v42 = vunpack.i.l.bf16 %v4050_v52 }
 0x10c   : > { %v1621_v50 = vsel %vm1616_vm11, %v1588_v16, %v2847_v35  ;;  %v1622_v11 = vsel %vm1616_vm11, %v1589_v23, %v2848_v30  ;;  %3140 = vrot.lane.b32.xlu0 %v4159_v53, %s3229_s22  ;;  %v1623_v17 = vsel %vm1616_vm11, %v1590_v39, %v2852_v55  ;;  %v1624_v49 = vsel %vm1616_vm11, %v1591_v48, %v2853_v45 }
 0x10d   : > { %v1651_v38 = vpack.c.bf16 %v1622_v11, %v1621_v50  ;;  %v2856_v47 = vpop.permute.xlu1 %2855  ;;  %v1652_v36 = vpack.c.bf16 %v1624_v49, %v1623_v17  ;;  %v2861_v24 = vpop.permute.xlu0 %2860  ;;  %v3154_v53 = vpack.i.bf16 %v4191_v2, %v4178_v62  ;;  %v2587_v62 = vunpack.i.l.bf16 %v4649_v5  ;;  %v4650_v2 = vld [vmem:[#allocation14_spill] sm:$0xff] }
 0x10e   : > { %v2663_v31 = vunpack.i.h.bf16 %v4650_v2  ;;  %v2662_v25 = vunpack.i.l.bf16 %v4650_v2  ;;  %v1430_v46 = vsel %vm1418_vm5, %v1397_v58, %v2668_v54  ;;  %v2858_v12 = vunpack.i.h.bf16 %v2856_v47  ;;  %v4656_v58 = vld [vmem:[#allocation4_spill] sm:$0xff] }
 0x10f   : > { %3145 = vrot.lane.b32.xlu1 %v4171_v41, %s3229_s22  ;;  %2490 = vmatprep.mubr.msk.bf16.mxu0 %vm1685_vm12, %v1651_v38  ;;  %v1396_v57 = vsel %vm1385_vm4, %v4655_v22, %v2587_v62  ;;  %v2857_v16 = vunpack.i.l.bf16 %v2856_v47  ;;  %v2862_v55 = vunpack.i.l.bf16 %v2861_v24  ;;  %v1463_v48 = vsel %vm1451_vm6, %v1430_v46, %v2748_v61 }
 0x110   : > { %3150 = vrot.lane.b32.xlu0 %v3614_v44, %s3230_s25  ;;  %2491 = vmatmul.mubr.msk.bf16.gmra.mrb[4].mxu0 %vm1685_vm12, %v1652_v36  ;;  %v4653_v44 = vld [vmem:[#allocation6_spill] sm:$0xff]  ;;  %v1428_v30 = vsel %vm1418_vm5, %v1395_v60, %v2663_v31  ;;  %v1429_v51 = vsel %vm1418_vm5, %v1396_v57, %v2667_v10 }
 0x111   : > { %v2866_v28 = vpop.permute.xlu1 %2865  ;;  %v2871_v29 = vpop.permute.xlu0 %2870  ;;  %v1394_v43 = vsel %vm1385_vm4, %v4653_v44, %v2582_v0  ;;  %v1461_v45 = vsel %vm1451_vm6, %v1428_v30, %v2743_v3  ;;  %v1462_v39 = vsel %vm1451_vm6, %v1429_v51, %v2747_v42 }
 0x112   : > { %v1427_v34 = vsel %vm1418_vm5, %v1394_v43, %v2662_v25  ;;  %v2868_v50 = vunpack.i.h.bf16 %v2866_v28  ;;  %v2867_v11 = vunpack.i.l.bf16 %v2866_v28  ;;  %v2873_v38 = vunpack.i.h.bf16 %v2871_v29 }
 0x113   : > { %3155 = vrot.lane.b32.xlu1 %v3154_v53, %s3230_s25  ;;  %v1460_v52 = vsel %vm1451_vm6, %v1427_v34, %v2742_v13  ;;  %v2872_v17 = vunpack.i.l.bf16 %v2871_v29  ;;  %v1494_v36 = vsel %vm1484_vm7, %v1461_v45, %v2858_v12  ;;  %v1495_v5 = vsel %vm1484_vm7, %v1462_v39, %v2862_v55  ;;  %v4659_v55 = vld [vmem:[#allocation16_spill] sm:$0xff] }
 0x114   : > { %3160 = vrot.lane.b32.xlu0 %v3743_v63, %s3231_s28  ;;  %v2863_v63 = vunpack.i.h.bf16 %v2861_v24  ;;  %v1493_v19 = vsel %vm1484_vm7, %v1460_v52, %v2857_v16  ;;  %v1527_v2 = vsel %vm1517_vm8, %v1494_v36, %v2868_v50  ;;  %v4657_v16 = vld [vmem:[#allocation23_spill] sm:$0xff]  ;;  %v2672_v39 = vunpack.i.l.bf16 %v4659_v55 }
 0x115   : > { %v2876_v35 = vpop.permute.xlu1 %2875  ;;  %v2881_v23 = vpop.permute.xlu0 %2880  ;;  %v1528_v28 = vsel %vm1517_vm8, %v1495_v5, %v2872_v17  ;;  %v4658_v52 = vld [vmem:[#allocation11_spill] sm:$0xff]  ;;  %v2752_v50 = vunpack.i.l.bf16 %v4054_v4 }
 0x116   : > { %v2878_v49 = vunpack.i.h.bf16 %v2876_v35  ;;  %v2877_v47 = vunpack.i.l.bf16 %v2876_v35  ;;  %v2883_v24 = vunpack.i.h.bf16 %v2881_v23  ;;  %v2882_v0 = vunpack.i.l.bf16 %v2881_v23 }
 0x117   : > { %3165 = vrot.lane.b32.xlu1 %v4280_v21, %s3231_s28  ;;  %v1496_v26 = vsel %vm1484_vm7, %v1463_v48, %v2863_v63  ;;  %v2592_v45 = vunpack.i.l.bf16 %v4658_v52  ;;  %v2673_v48 = vunpack.i.h.bf16 %v4659_v55 }
 0x118   : > { %3170 = vrot.lane.b32.xlu0 %v4171_v41, %s3232_s4  ;;  %v1526_v41 = vsel %vm1517_vm8, %v1493_v19, %v2867_v11  ;;  %v1529_v6 = vsel %vm1517_vm8, %v1496_v26, %v2873_v38  ;;  %v1560_v56 = vsel %vm1550_vm9, %v1527_v2, %v2878_v49  ;;  %v1561_v10 = vsel %vm1550_vm9, %v1528_v28, %v2882_v0  ;;  %v4660_v38 = vld [vmem:[#allocation13_spill] sm:$0xff]  ;;  %v4661_v0 = vld [vmem:[#allocation12_spill] sm:$0xff] }
 0x119   : > { %v2886_v7 = vpop.permute.xlu1 %2885  ;;  %v2891_v37 = vpop.permute.xlu0 %2890  ;;  %v1559_v60 = vsel %vm1550_vm9, %v1526_v41, %v2877_v47  ;;  %v1562_v29 = vsel %vm1550_vm9, %v1529_v6, %v2883_v24  ;;  %v1398_v17 = vsel %vm1385_vm4, %v4660_v38, %v2592_v45  ;;  %v2753_v49 = vunpack.i.h.bf16 %v4054_v4 }
 0x11a   : > { %v2888_v1 = vunpack.i.h.bf16 %v2886_v7  ;;  %v2887_v62 = vunpack.i.l.bf16 %v2886_v7  ;;  %v2893_v31 = vunpack.i.h.bf16 %v2891_v37  ;;  %v2892_v25 = vunpack.i.l.bf16 %v2891_v37 }
 0x11b   : > { %3175 = vrot.lane.b32.xlu1 %v3174_v40, %s3232_s4  ;;  %v1431_v26 = vsel %vm1418_vm5, %v1398_v17, %v2672_v39 }
 0x11c   : > { %3180 = vrot.lane.b32.xlu0 %v3154_v53, %s3233_s5  ;;  %v1592_v13 = vsel %vm1583_vm10, %v1559_v60, %v2887_v62  ;;  %v1593_v53 = vsel %vm1583_vm10, %v1560_v56, %v2888_v1  ;;  %v1594_v61 = vsel %vm1583_vm10, %v1561_v10, %v2892_v25  ;;  %v1595_v42 = vsel %vm1583_vm10, %v1562_v29, %v2893_v31  ;;  %v4662_v56 = vld [vmem:[#allocation17_spill] sm:$0xff] }
 0x11d   : > { %v2896_v54 = vpop.permute.xlu1 %2895  ;;  %v2901_v3 = vpop.permute.xlu0 %2900  ;;  %v1464_v1 = vsel %vm1451_vm6, %v1431_v26, %v2752_v50 }
 0x11e   : > { %v2898_v44 = vunpack.i.h.bf16 %v2896_v54  ;;  %v2897_v43 = vunpack.i.l.bf16 %v2896_v54  ;;  %v2903_v40 = vunpack.i.h.bf16 %v2901_v3  ;;  %v2902_v59 = vunpack.i.l.bf16 %v2901_v3 }
 0x11f   : > { %3185 = vrot.lane.b32.xlu1 %v4656_v58, %s3233_s5 }
 0x120   : > { %v1625_v22 = vsel %vm1616_vm11, %v1592_v13, %v2897_v43  ;;  %v1626_v57 = vsel %vm1616_vm11, %v1593_v53, %v2898_v44  ;;  %3190 = vrot.lane.b32.xlu0 %v4280_v21, %s3234_s6  ;;  %v1627_v30 = vsel %vm1616_vm11, %v1594_v61, %v2902_v59  ;;  %v1628_v35 = vsel %vm1616_vm11, %v1595_v42, %v2903_v40 }
 0x121   : > { %v1653_v34 = vpack.c.bf16 %v1626_v57, %v1625_v22  ;;  %v2906_v46 = vpop.permute.xlu1 %2905  ;;  %v1654_v51 = vpack.c.bf16 %v1628_v35, %v1627_v30  ;;  %v2911_v12 = vpop.permute.xlu0 %2910  ;;  %v2593_v21 = vunpack.i.h.bf16 %v4658_v52 }
 0x122   : > { %v2908_v7 = vunpack.i.h.bf16 %v2906_v46  ;;  %v2907_v19 = vunpack.i.l.bf16 %v2906_v46  ;;  %v2913_v36 = vunpack.i.h.bf16 %v2911_v12  ;;  %v2912_v24 = vunpack.i.l.bf16 %v2911_v12 }
 0x123   : > { %3195 = vrot.lane.b32.xlu1 %v4657_v16, %s3234_s6  ;;  %2494 = vmatprep.mubr.msk.bf16.mxu0 %vm1685_vm12, %v1653_v34  ;;  %v1399_v37 = vsel %vm1385_vm4, %v4661_v0, %v2593_v21 }
 0x124   : > { %2495 = vmatmul.mubr.msk.bf16.gmra.mrb[8].mxu0 %vm1685_vm12, %v1654_v51  ;;  %v1432_v5 = vsel %vm1418_vm5, %v1399_v37, %v2673_v48  ;;  %v1467_v60 = vsel %vm1451_vm6, %v3922_v32, %v2908_v7  ;;  %v1466_v54 = vsel %vm1451_vm6, %v4662_v56, %v2907_v19  ;;  %v1497_v10 = vsel %vm1484_vm7, %v1464_v1, %v2912_v24 }
 0x125   : > { %v2916_v23 = vpop.permute.xlu1 %2915  ;;  %v2921_v63 = vpop.permute.xlu0 %2920  ;;  %v1465_v31 = vsel %vm1451_vm6, %v1432_v5, %v2753_v49 }
 0x126   : > { %v2923_v62 = vunpack.i.h.bf16 %v2921_v63  ;;  %v2922_v41 = vunpack.i.l.bf16 %v2921_v63  ;;  %v2917_v4 = vunpack.i.l.bf16 %v2916_v23  ;;  %v1498_v29 = vsel %vm1484_vm7, %v1465_v31, %v2913_v36 }
 0x127   : > { %v2918_v44 = vunpack.i.h.bf16 %v2916_v23 }
 0x128   : > { %v1530_v53 = vsel %vm1517_vm8, %v1497_v10, %v2922_v41  ;;  %v1531_v40 = vsel %vm1517_vm8, %v1498_v29, %v2923_v62  ;;  %v1499_v32 = vsel %vm1484_vm7, %v1466_v54, %v2917_v4 }
 0x129   : > { %v2926_v11 = vpop.permute.xlu1 %2925  ;;  %v2931_v47 = vpop.permute.xlu0 %2930  ;;  %v1500_v12 = vsel %vm1484_vm7, %v1467_v60, %v2918_v44 }
 0x12a   : > { %v2933_v25 = vunpack.i.h.bf16 %v2931_v47  ;;  %v2932_v28 = vunpack.i.l.bf16 %v2931_v47  ;;  %v2927_v43 = vunpack.i.l.bf16 %v2926_v11  ;;  %v2928_v59 = vunpack.i.h.bf16 %v2926_v11 }
 0x12c   : > { %v1563_v42 = vsel %vm1550_vm9, %v1530_v53, %v2932_v28  ;;  %v1564_v22 = vsel %vm1550_vm9, %v1531_v40, %v2933_v25  ;;  %v1532_v16 = vsel %vm1517_vm8, %v1499_v32, %v2927_v43  ;;  %v1533_v45 = vsel %vm1517_vm8, %v1500_v12, %v2928_v59 }
 0x12d   : > { %v2936_v2 = vpop.permute.xlu1 %2935  ;;  %v2941_v6 = vpop.permute.xlu0 %2940 }
 0x12e   : > { %v2943_v3 = vunpack.i.h.bf16 %v2941_v6  ;;  %v2942_v13 = vunpack.i.l.bf16 %v2941_v6  ;;  %v2937_v58 = vunpack.i.l.bf16 %v2936_v2  ;;  %v2938_v57 = vunpack.i.h.bf16 %v2936_v2 }
 0x130   : > { %v1596_v23 = vsel %vm1583_vm10, %v1563_v42, %v2942_v13  ;;  %v1597_v52 = vsel %vm1583_vm10, %v1564_v22, %v2943_v3  ;;  %v1565_v63 = vsel %vm1550_vm9, %v1532_v16, %v2937_v58  ;;  %v1566_v48 = vsel %vm1550_vm9, %v1533_v45, %v2938_v57 }
 0x131   : > { %v2946_v61 = vpop.permute.xlu1 %2945  ;;  %v2951_v34 = vpop.permute.xlu0 %2950 }
 0x132   : > { %v2948_v30 = vunpack.i.h.bf16 %v2946_v61  ;;  %v2947_v35 = vunpack.i.l.bf16 %v2946_v61  ;;  %v2953_v46 = vunpack.i.h.bf16 %v2951_v34  ;;  %v2952_v51 = vunpack.i.l.bf16 %v2951_v34 }
 0x134   : > { %v1629_v21 = vsel %vm1616_vm11, %v1596_v23, %v2952_v51  ;;  %v1630_v55 = vsel %vm1616_vm11, %v1597_v52, %v2953_v46  ;;  %v1598_v49 = vsel %vm1583_vm10, %v1565_v63, %v2947_v35  ;;  %v1599_v47 = vsel %vm1583_vm10, %v1566_v48, %v2948_v30 }
 0x135   : > { %v2956_v39 = vpop.permute.xlu1 %2955  ;;  %v1655_v50 = vpack.c.bf16 %v1630_v55, %v1629_v21  ;;  %v2961_v17 = vpop.permute.xlu0 %2960 }
 0x136   : > { %v2958_v11 = vunpack.i.h.bf16 %v2956_v39  ;;  %v2957_v38 = vunpack.i.l.bf16 %v2956_v39  ;;  %v2962_v5 = vunpack.i.l.bf16 %v2961_v17  ;;  %v2963_v62 = vunpack.i.h.bf16 %v2961_v17 }
 0x137   : > { %2498 = vmatprep.mubr.msk.bf16.mxu0 %vm1685_vm12, %v1655_v50 }
 0x138   : > { %v1631_v7 = vsel %vm1616_vm11, %v1598_v49, %v2957_v38  ;;  %v1632_v19 = vsel %vm1616_vm11, %v1599_v47, %v2958_v11  ;;  %v1468_v28 = vsel %vm1451_vm6, %v3932_v8, %v2962_v5  ;;  %v1469_v54 = vsel %vm1451_vm6, %v3935_v9, %v2963_v62 }
 0x139   : > { %v1656_v36 = vpack.c.bf16 %v1632_v19, %v1631_v7  ;;  %v2966_v24 = vpop.permute.xlu1 %2965  ;;  %v2971_v0 = vpop.permute.xlu0 %2970 }
 0x13a   : > { %v2968_v2 = vunpack.i.h.bf16 %v2966_v24  ;;  %v2967_v31 = vunpack.i.l.bf16 %v2966_v24  ;;  %v2973_v4 = vunpack.i.h.bf16 %v2971_v0  ;;  %v2972_v25 = vunpack.i.l.bf16 %v2971_v0 }
 0x13b   : > { %2499 = vmatmul.mubr.msk.bf16.gmra.mrb[12].mxu0 %vm1685_vm12, %v1656_v36 }
 0x13c   : > { %v1471_v3 = vsel %vm1451_vm6, %v3950_v27, %v2968_v2  ;;  %v1470_v13 = vsel %vm1451_vm6, %v3953_v33, %v2967_v31  ;;  %v1501_v53 = vsel %vm1484_vm7, %v1468_v28, %v2972_v25  ;;  %v1502_v8 = vsel %vm1484_vm7, %v1469_v54, %v2973_v4 }
 0x13d   : > { %v2976_v37 = vpop.permute.xlu1 %2975  ;;  %v2981_v26 = vpop.permute.xlu0 %2980 }
 0x13e   : > { %v2983_v6 = vunpack.i.h.bf16 %v2981_v26  ;;  %v2982_v60 = vunpack.i.l.bf16 %v2981_v26  ;;  %v2977_v10 = vunpack.i.l.bf16 %v2976_v37  ;;  %v2978_v40 = vunpack.i.h.bf16 %v2976_v37 }
 0x140   : > { %v1534_v9 = vsel %vm1517_vm8, %v1501_v53, %v2982_v60  ;;  %v1535_v32 = vsel %vm1517_vm8, %v1502_v8, %v2983_v6  ;;  %v1503_v27 = vsel %vm1484_vm7, %v1470_v13, %v2977_v10  ;;  %v1504_v23 = vsel %vm1484_vm7, %v1471_v3, %v2978_v40 }
 0x141   : > { %v2986_v1 = vpop.permute.xlu1 %2985  ;;  %v2991_v41 = vpop.permute.xlu0 %2990 }
 0x142   : > { %v2993_v29 = vunpack.i.h.bf16 %v2991_v41  ;;  %v2992_v44 = vunpack.i.l.bf16 %v2991_v41  ;;  %v2987_v59 = vunpack.i.l.bf16 %v2986_v1  ;;  %v2988_v42 = vunpack.i.h.bf16 %v2986_v1 }
 0x144   : > { %v1567_v34 = vsel %vm1550_vm9, %v1534_v9, %v2992_v44  ;;  %v1568_v33 = vsel %vm1550_vm9, %v1535_v32, %v2993_v29  ;;  %v1536_v52 = vsel %vm1517_vm8, %v1503_v27, %v2987_v59  ;;  %v1537_v21 = vsel %vm1517_vm8, %v1504_v23, %v2988_v42 }
 0x145   : > { %v2996_v56 = vpop.permute.xlu1 %2995  ;;  %v3001_v43 = vpop.permute.xlu0 %3000 }
 0x146   : > { %v3003_v58 = vunpack.i.h.bf16 %v3001_v43  ;;  %v3002_v61 = vunpack.i.l.bf16 %v3001_v43  ;;  %v2997_v22 = vunpack.i.l.bf16 %v2996_v56  ;;  %v2998_v30 = vunpack.i.h.bf16 %v2996_v56 }
 0x148   : > { %v1600_v45 = vsel %vm1583_vm10, %v1567_v34, %v3002_v61  ;;  %v1601_v63 = vsel %vm1583_vm10, %v1568_v33, %v3003_v58  ;;  %v1569_v55 = vsel %vm1550_vm9, %v1536_v52, %v2997_v22  ;;  %v1570_v11 = vsel %vm1550_vm9, %v1537_v21, %v2998_v30 }
 0x149   : > { %v3006_v57 = vpop.permute.xlu1 %3005  ;;  %v3011_v35 = vpop.permute.xlu0 %3010 }
 0x14a   : > { %v3008_v46 = vunpack.i.h.bf16 %v3006_v57  ;;  %v3007_v51 = vunpack.i.l.bf16 %v3006_v57  ;;  %v3013_v12 = vunpack.i.h.bf16 %v3011_v35  ;;  %v3012_v16 = vunpack.i.l.bf16 %v3011_v35 }
 0x14c   : > { %v1633_v48 = vsel %vm1616_vm11, %v1600_v45, %v3012_v16  ;;  %v1634_v50 = vsel %vm1616_vm11, %v1601_v63, %v3013_v12  ;;  %v1602_v7 = vsel %vm1583_vm10, %v1569_v55, %v3007_v51  ;;  %v1603_v19 = vsel %vm1583_vm10, %v1570_v11, %v3008_v46 }
 0x14d   : > { %v3016_v39 = vpop.permute.xlu1 %3015  ;;  %v3021_v49 = vpop.permute.xlu0 %3020  ;;  %v1657_v47 = vpack.c.bf16 %v1634_v50, %v1633_v48 }
 0x14e   : > { %v3018_v38 = vunpack.i.h.bf16 %v3016_v39  ;;  %v3017_v17 = vunpack.i.l.bf16 %v3016_v39  ;;  %v3022_v62 = vunpack.i.l.bf16 %v3021_v49  ;;  %v3023_v2 = vunpack.i.h.bf16 %v3021_v49 }
 0x14f   : > { %2502 = vmatprep.mubr.msk.bf16.mxu1 %vm1685_vm12, %v1657_v47 }
 0x150   : > { %v1635_v36 = vsel %vm1616_vm11, %v1602_v7, %v3017_v17  ;;  %v1636_v24 = vsel %vm1616_vm11, %v1603_v19, %v3018_v38  ;;  %v1472_v60 = vsel %vm1451_vm6, %v3962_v14, %v3022_v62  ;;  %v1473_v29 = vsel %vm1451_vm6, %v3965_v18, %v3023_v2 }
 0x151   : > { %v1658_v0 = vpack.c.bf16 %v1636_v24, %v1635_v36  ;;  %v3026_v37 = vpop.permute.xlu1 %3025  ;;  %v3031_v26 = vpop.permute.xlu0 %3030 }
 0x152   : > { %v3028_v4 = vunpack.i.h.bf16 %v3026_v37  ;;  %v3027_v25 = vunpack.i.l.bf16 %v3026_v37  ;;  %v3033_v28 = vunpack.i.h.bf16 %v3031_v26  ;;  %v3032_v6 = vunpack.i.l.bf16 %v3031_v26 }
 0x153   : > { %2503 = vmatmul.mubr.msk.bf16.vlgmr.msra.gmra.mrb[0].mxu1 %vm1685_vm12, %v1658_v0 }
 0x154   : > { %v1475_v53 = vsel %vm1451_vm6, %v3978_v15, %v3028_v4  ;;  %v1474_v8 = vsel %vm1451_vm6, %v3981_v20, %v3027_v25  ;;  %v1505_v40 = vsel %vm1484_vm7, %v1472_v60, %v3032_v6  ;;  %v1506_v14 = vsel %vm1484_vm7, %v1473_v29, %v3033_v28  ;;  %v4663_v28 = vld [vmem:[#allocation18_spill] sm:$0xff] }
 0x155   : > { %v3036_v5 = vpop.permute.xlu1 %3035  ;;  %v3041_v1 = vpop.permute.xlu0 %3040 }
 0x156   : > { %v3043_v56 = vunpack.i.h.bf16 %v3041_v1  ;;  %v3042_v54 = vunpack.i.l.bf16 %v3041_v1  ;;  %v3037_v44 = vunpack.i.l.bf16 %v3036_v5  ;;  %v3038_v59 = vunpack.i.h.bf16 %v3036_v5 }
 0x158   : > { %v1538_v18 = vsel %vm1517_vm8, %v1505_v40, %v3042_v54  ;;  %v1539_v32 = vsel %vm1517_vm8, %v1506_v14, %v3043_v56  ;;  %v1507_v15 = vsel %vm1484_vm7, %v1474_v8, %v3037_v44  ;;  %v1508_v12 = vsel %vm1484_vm7, %v1475_v53, %v3038_v59  ;;  %v4665_v53 = vld [vmem:[#allocation25_spill] sm:$0xff]  ;;  %v4666_v40 = vld [vmem:[#allocation26_spill] sm:$0xff] }
 0x159   : > { %v3046_v41 = vpop.permute.xlu1 %3045  ;;  %v3051_v31 = vpop.permute.xlu0 %3050 }
 0x15a   : > { %v3053_v43 = vunpack.i.h.bf16 %v3051_v31  ;;  %v3052_v3 = vunpack.i.l.bf16 %v3051_v31  ;;  %v3047_v58 = vunpack.i.l.bf16 %v3046_v41  ;;  %v3048_v42 = vunpack.i.h.bf16 %v3046_v41 }
 0x15c   : > { %v1571_v27 = vsel %vm1550_vm9, %v1538_v18, %v3052_v3  ;;  %v1572_v20 = vsel %vm1550_vm9, %v1539_v32, %v3053_v43  ;;  %v1540_v16 = vsel %vm1517_vm8, %v1507_v15, %v3047_v58  ;;  %v1541_v45 = vsel %vm1517_vm8, %v1508_v12, %v3048_v42 }
 0x15d   : > { %v3056_v10 = vpop.permute.xlu1 %3055  ;;  %v3061_v13 = vpop.permute.xlu0 %3060 }
 0x15e   : > { %v3063_v61 = vunpack.i.h.bf16 %v3061_v13  ;;  %v3062_v9 = vunpack.i.l.bf16 %v3061_v13  ;;  %v3057_v22 = vunpack.i.l.bf16 %v3056_v10  ;;  %v3058_v34 = vunpack.i.h.bf16 %v3056_v10  ;;  %v4664_v10 = vld [vmem:[#allocation19_spill] sm:$0xff] }
 0x160   : > { %v1604_v23 = vsel %vm1583_vm10, %v1571_v27, %v3062_v9  ;;  %v1605_v52 = vsel %vm1583_vm10, %v1572_v20, %v3063_v61  ;;  %v1573_v63 = vsel %vm1550_vm9, %v1540_v16, %v3057_v22  ;;  %v1574_v48 = vsel %vm1550_vm9, %v1541_v45, %v3058_v34 }
 0x161   : > { %v3066_v57 = vpop.permute.xlu1 %3065  ;;  %v3071_v33 = vpop.permute.xlu0 %3070 }
 0x162   : > { %v3068_v30 = vunpack.i.h.bf16 %v3066_v57  ;;  %v3067_v35 = vunpack.i.l.bf16 %v3066_v57  ;;  %v3073_v46 = vunpack.i.h.bf16 %v3071_v33  ;;  %v3072_v51 = vunpack.i.l.bf16 %v3071_v33 }
 0x164   : > { %v1637_v21 = vsel %vm1616_vm11, %v1604_v23, %v3072_v51  ;;  %v1638_v55 = vsel %vm1616_vm11, %v1605_v52, %v3073_v46  ;;  %v1606_v49 = vsel %vm1583_vm10, %v1573_v63, %v3067_v35  ;;  %v1607_v47 = vsel %vm1583_vm10, %v1574_v48, %v3068_v30 }
 0x165   : > { %v3076_v39 = vpop.permute.xlu1 %3075  ;;  %v1659_v50 = vpack.c.bf16 %v1638_v55, %v1637_v21  ;;  %v3081_v17 = vpop.permute.xlu0 %3080 }
 0x166   : > { %v3078_v11 = vunpack.i.h.bf16 %v3076_v39  ;;  %v3077_v38 = vunpack.i.l.bf16 %v3076_v39  ;;  %v3082_v5 = vunpack.i.l.bf16 %v3081_v17  ;;  %v3083_v62 = vunpack.i.h.bf16 %v3081_v17 }
 0x167   : > { %2506 = vmatprep.mubr.msk.bf16.mxu1 %vm1685_vm12, %v1659_v50 }
 0x168   : > { %v1639_v7 = vsel %vm1616_vm11, %v1606_v49, %v3077_v38  ;;  %v1640_v19 = vsel %vm1616_vm11, %v1607_v47, %v3078_v11  ;;  %v1476_v6 = vsel %vm1451_vm6, %v4663_v28, %v3082_v5  ;;  %v1477_v29 = vsel %vm1451_vm6, %v4664_v10, %v3083_v62 }
 0x169   : > { %v1660_v36 = vpack.c.bf16 %v1640_v19, %v1639_v7  ;;  %v3086_v24 = vpop.permute.xlu1 %3085  ;;  %v3091_v0 = vpop.permute.xlu0 %3090 }
 0x16a   : > { %v3088_v2 = vunpack.i.h.bf16 %v3086_v24  ;;  %v3087_v31 = vunpack.i.l.bf16 %v3086_v24  ;;  %v3093_v4 = vunpack.i.h.bf16 %v3091_v0  ;;  %v3092_v25 = vunpack.i.l.bf16 %v3091_v0 }
 0x16b   : > { %2507 = vmatmul.mubr.msk.bf16.gmra.mrb[4].mxu1 %vm1685_vm12, %v1660_v36 }
 0x16c   : > { %v1479_v8 = vsel %vm1451_vm6, %v4665_v53, %v3088_v2  ;;  %v1478_v14 = vsel %vm1451_vm6, %v4666_v40, %v3087_v31  ;;  %v1509_v59 = vsel %vm1484_vm7, %v1476_v6, %v3092_v25  ;;  %v1510_v58 = vsel %vm1484_vm7, %v1477_v29, %v3093_v4  ;;  %v4669_v40 = vld [vmem:[#allocation20_spill] sm:$0xff] }
 0x16d   : > { %v3096_v37 = vpop.permute.xlu1 %3095 }
 0x16e   : > { %v3101_v26 = vpop.permute.xlu0 %3100  ;;  %v3097_v44 = vunpack.i.l.bf16 %v3096_v37  ;;  %v3098_v61 = vunpack.i.h.bf16 %v3096_v37 }
 0x16f   : > { %v3103_v60 = vunpack.i.h.bf16 %v3101_v26  ;;  %v3102_v56 = vunpack.i.l.bf16 %v3101_v26 }
 0x170   : > { %v1511_v20 = vsel %vm1484_vm7, %v1478_v14, %v3097_v44  ;;  %v1512_v23 = vsel %vm1484_vm7, %v1479_v8, %v3098_v61  ;;  %v4668_v44 = vld [vmem:[#allocation28_spill] sm:$0xff] }
 0x171   : > { %v3106_v1 = vpop.permute.xlu1 %3105  ;;  %v1542_v42 = vsel %vm1517_vm8, %v1509_v59, %v3102_v56  ;;  %v1543_v22 = vsel %vm1517_vm8, %v1510_v58, %v3103_v60  ;;  %v4667_v60 = vld [vmem:[#allocation27_spill] sm:$0xff]  ;;  %v4670_v59 = vld [vmem:[#allocation29_spill] sm:$0xff] }
 0x172   : > { %v3111_v41 = vpop.permute.xlu0 %3110  ;;  %v3107_v9 = vunpack.i.l.bf16 %v3106_v1  ;;  %v3108_v57 = vunpack.i.h.bf16 %v3106_v1 }
 0x173   : > { %v3113_v43 = vunpack.i.h.bf16 %v3111_v41  ;;  %v3112_v3 = vunpack.i.l.bf16 %v3111_v41 }
 0x174   : > { %v1544_v52 = vsel %vm1517_vm8, %v1511_v20, %v3107_v9  ;;  %v1545_v21 = vsel %vm1517_vm8, %v1512_v23, %v3108_v57 }
 0x175   : > { %v3116_v54 = vpop.permute.xlu1 %3115  ;;  %v1575_v34 = vsel %vm1550_vm9, %v1542_v42, %v3112_v3  ;;  %v1576_v33 = vsel %vm1550_vm9, %v1543_v22, %v3113_v43 }
 0x176   : > { %v3121_v13 = vpop.permute.xlu0 %3120  ;;  %v3117_v15 = vunpack.i.l.bf16 %v3116_v54  ;;  %v3118_v30 = vunpack.i.h.bf16 %v3116_v54 }
 0x177   : > { %v3123_v18 = vunpack.i.h.bf16 %v3121_v13  ;;  %v3122_v32 = vunpack.i.l.bf16 %v3121_v13 }
 0x178   : > { %v1577_v55 = vsel %vm1550_vm9, %v1544_v52, %v3117_v15  ;;  %v1578_v11 = vsel %vm1550_vm9, %v1545_v21, %v3118_v30 }
 0x179   : > { %v3126_v27 = vpop.permute.xlu1 %3125  ;;  %v1608_v45 = vsel %vm1583_vm10, %v1575_v34, %v3122_v32  ;;  %v1609_v63 = vsel %vm1583_vm10, %v1576_v33, %v3123_v18 }
 0x17a   : > { %v3131_v35 = vpop.permute.xlu0 %3130  ;;  %v3128_v46 = vunpack.i.h.bf16 %v3126_v27  ;;  %v3127_v51 = vunpack.i.l.bf16 %v3126_v27 }
 0x17b   : > { %v3133_v12 = vunpack.i.h.bf16 %v3131_v35  ;;  %v3132_v16 = vunpack.i.l.bf16 %v3131_v35 }
 0x17c   : > { %v1610_v7 = vsel %vm1583_vm10, %v1577_v55, %v3127_v51  ;;  %v1611_v19 = vsel %vm1583_vm10, %v1578_v11, %v3128_v46 }
 0x17d   : > { %v1641_v39 = vsel %vm1616_vm11, %v1608_v45, %v3132_v16  ;;  %v1642_v48 = vsel %vm1616_vm11, %v1609_v63, %v3133_v12  ;;  %v3136_v50 = vpop.permute.xlu1 %3135 }
 0x17e   : > { %v1661_v38 = vpack.c.bf16 %v1642_v48, %v1641_v39  ;;  %v3138_v17 = vunpack.i.h.bf16 %v3136_v50  ;;  %v3137_v49 = vunpack.i.l.bf16 %v3136_v50  ;;  %v3141_v47 = vpop.permute.xlu0 %3140 }
 0x17f   : > { %v3142_v62 = vunpack.i.l.bf16 %v3141_v47  ;;  %v3143_v2 = vunpack.i.h.bf16 %v3141_v47 }
 0x180   : > { %v1643_v36 = vsel %vm1616_vm11, %v1610_v7, %v3137_v49  ;;  %v1644_v24 = vsel %vm1616_vm11, %v1611_v19, %v3138_v17  ;;  %2510 = vmatprep.mubr.msk.bf16.mxu1 %vm1685_vm12, %v1661_v38 }
 0x181   : > { %v1662_v0 = vpack.c.bf16 %v1644_v24, %v1643_v36  ;;  %v3146_v37 = vpop.permute.xlu1 %3145  ;;  %v1480_v56 = vsel %vm1451_vm6, %v4667_v60, %v3142_v62  ;;  %v1481_v43 = vsel %vm1451_vm6, %v4668_v44, %v3143_v2 }
 0x182   : > { %v3151_v26 = vpop.permute.xlu0 %3150  ;;  %v3148_v4 = vunpack.i.h.bf16 %v3146_v37  ;;  %v3147_v25 = vunpack.i.l.bf16 %v3146_v37 }
 0x183   : > { %2511 = vmatmul.mubr.msk.bf16.gmra.mrb[8].mxu1 %vm1685_vm12, %v1662_v0  ;;  %v3153_v28 = vunpack.i.h.bf16 %v3151_v26  ;;  %v3152_v6 = vunpack.i.l.bf16 %v3151_v26 }
 0x184   : > { %v1483_v14 = vsel %vm1451_vm6, %v4669_v40, %v3148_v4  ;;  %v1482_v58 = vsel %vm1451_vm6, %v4670_v59, %v3147_v25 }
 0x185   : > { %v3156_v5 = vpop.permute.xlu1 %3155  ;;  %v1513_v61 = vsel %vm1484_vm7, %v1480_v56, %v3152_v6  ;;  %v1514_v9 = vsel %vm1484_vm7, %v1481_v43, %v3153_v28 }
 0x186   : > { %v3161_v1 = vpop.permute.xlu0 %3160  ;;  %v3157_v3 = vunpack.i.l.bf16 %v3156_v5  ;;  %v3158_v18 = vunpack.i.h.bf16 %v3156_v5 }
 0x187   : > { %v3163_v54 = vunpack.i.h.bf16 %v3161_v1  ;;  %v3162_v10 = vunpack.i.l.bf16 %v3161_v1 }
 0x188   : > { %v1515_v33 = vsel %vm1484_vm7, %v1482_v58, %v3157_v3  ;;  %v1516_v45 = vsel %vm1484_vm7, %v1483_v14, %v3158_v18 }
 0x189   : > { %v3166_v41 = vpop.permute.xlu1 %3165  ;;  %v1546_v57 = vsel %vm1517_vm8, %v1513_v61, %v3162_v10  ;;  %v1547_v15 = vsel %vm1517_vm8, %v1514_v9, %v3163_v54 }
 0x18a   : > { %v3171_v31 = vpop.permute.xlu0 %3170  ;;  %v3167_v32 = vunpack.i.l.bf16 %v3166_v41  ;;  %v3168_v27 = vunpack.i.h.bf16 %v3166_v41 }
 0x18b   : > { %v3173_v13 = vunpack.i.h.bf16 %v3171_v31  ;;  %v3172_v53 = vunpack.i.l.bf16 %v3171_v31 }
 0x18c   : > { %v1548_v63 = vsel %vm1517_vm8, %v1515_v33, %v3167_v32  ;;  %v1549_v39 = vsel %vm1517_vm8, %v1516_v45, %v3168_v27  ;;  %v4671_v27 = vmov 0.0  }
 0x18d   : > { %v3176_v29 = vpop.permute.xlu1 %3175  ;;  %v1579_v30 = vsel %vm1550_vm9, %v1546_v57, %v3172_v53  ;;  %v1580_v35 = vsel %vm1550_vm9, %v1547_v15, %v3173_v13  ;;  %211 = vst [vmem:[%s4513_s18] sm:$0x3] %v4671_v27 }
 0x18e   : > { %v3181_v8 = vpop.permute.xlu0 %3180  ;;  %v3177_v20 = vunpack.i.l.bf16 %v3176_v29  ;;  %v3178_v46 = vunpack.i.h.bf16 %v3176_v29 }
 0x18f   : > { %v3183_v42 = vunpack.i.h.bf16 %v3181_v8  ;;  %v3182_v22 = vunpack.i.l.bf16 %v3181_v8 }
 0x190   : > { %v1581_v48 = vsel %vm1550_vm9, %v1548_v63, %v3177_v20  ;;  %v1582_v17 = vsel %vm1550_vm9, %v1549_v39, %v3178_v46 }
 0x191   : > { %v3186_v34 = vpop.permute.xlu1 %3185  ;;  %v1612_v21 = vsel %vm1583_vm10, %v1579_v30, %v3182_v22  ;;  %v1613_v55 = vsel %vm1583_vm10, %v1580_v35, %v3183_v42 }
 0x192   : > { %v3191_v51 = vpop.permute.xlu0 %3190  ;;  %v3188_v12 = vunpack.i.h.bf16 %v3186_v34  ;;  %v3187_v16 = vunpack.i.l.bf16 %v3186_v34 }
 0x193   : > { %v3193_v23 = vunpack.i.h.bf16 %v3191_v51  ;;  %v3192_v52 = vunpack.i.l.bf16 %v3191_v51 }
 0x194   : > { %v1614_v19 = vsel %vm1583_vm10, %v1581_v48, %v3187_v16  ;;  %v1615_v36 = vsel %vm1583_vm10, %v1582_v17, %v3188_v12 }
 0x195   : > { %v1645_v50 = vsel %vm1616_vm11, %v1612_v21, %v3192_v52  ;;  %v1646_v11 = vsel %vm1616_vm11, %v1613_v55, %v3193_v23  ;;  %v3196_v38 = vpop.permute.xlu1 %3195 }
 0x196   : > { %v1663_v49 = vpack.c.bf16 %v1646_v11, %v1645_v50  ;;  %v3198_v47 = vunpack.i.h.bf16 %v3196_v38  ;;  %v3197_v7 = vunpack.i.l.bf16 %v3196_v38 }
 0x198   : > { %v1647_v24 = vsel %vm1616_vm11, %v1614_v19, %v3197_v7  ;;  %v1648_v0 = vsel %vm1616_vm11, %v1615_v36, %v3198_v47  ;;  %2514 = vmatprep.mubr.msk.bf16.mxu1 %vm1685_vm12, %v1663_v49 }
 0x199   : > { %v1664_v37 = vpack.c.bf16 %v1648_v0, %v1647_v24 }
 0x19b   : > { %2515 = vmatmul.mubr.msk.bf16.gmra.mrb[12].mxu1 %vm1685_vm12, %v1664_v37 }
 0x1cf   : > { %v2488_v26 = vpop.f32.mrb[0].mxu0 }
 0x1d0   : > { %v1772_v5 = vpop.f32.mrb[1].mxu0  ;;  %v1942_v28 = vmul.f32 %v2488_v26, %v2488_v26 }
 0x1d1   : > { %v2489_v1 = vpop.f32.mrb[2].mxu0  ;;  %v1940_v2 = vmul.f32 %v1772_v5, %v1772_v5 }
 0x1d2   : > { %v2374_v62 = vpack.c.bf16 %v2489_v1, %v2488_v26  ;;  %v1775_v41 = vpop.f32.mrb[3].mxu0  ;;  %v1943_v56 = vmul.f32 %v2489_v1, %v2489_v1 }
 0x1d3   : > { %v1900_v31 = vadd.f32 %v1775_v41, %v1772_v5  ;;  %v1941_v4 = vmul.f32 %v1775_v41, %v1775_v41  ;;  %v2369_v25 = vpack.c.bf16 %v1775_v41, %v1772_v5 }
 0x1d4   : > { %2446 = vst [vmem:[%s4503_s10 + $0x8] sm:$0xff] %v2374_v62  }
 0x1d5   : > { %v1901_v6 = vadd.f32 %v2488_v26, %v1900_v31  ;;  %v1972_v60 = vadd.f32 %v1941_v4, %v1940_v2  ;;  %2370 = vst [vmem:[%s4503_s10] sm:$0xff] %v2369_v25  }
 0x1d7   : > { %v1973_v54 = vadd.f32 %v1972_v60, %v1942_v28  ;;  %v1902_v10 = vadd.f32 %v2489_v1, %v1901_v6 }
 0x1d9   : > { %v1974_v29 = vadd.f32 %v1973_v54, %v1943_v56 }
 0x1e3   : > { %v2492_v44 = vpop.f32.mrb[4].mxu0 }
 0x1e4   : > { %v1788_v43 = vpop.f32.mrb[5].mxu0  ;;  %v1946_v9 = vmul.f32 %v2492_v44, %v2492_v44 }
 0x1e5   : > { %v1903_v3 = vadd.f32 %v1902_v10, %v1788_v43  ;;  %v1944_v13 = vmul.f32 %v1788_v43, %v1788_v43  ;;  %v2493_v53 = vpop.f32.mrb[6].mxu0 }
 0x1e6   : > { %v2384_v8 = vpack.c.bf16 %v2493_v53, %v2492_v44  ;;  %v1791_v40 = vpop.f32.mrb[7].mxu0  ;;  %v1947_v42 = vmul.f32 %v2493_v53, %v2493_v53 }
 0x1e7   : > { %v1975_v14 = vadd.f32 %v1974_v29, %v1944_v13  ;;  %v1904_v59 = vadd.f32 %v1903_v3, %v1791_v40  ;;  %v1945_v58 = vmul.f32 %v1791_v40, %v1791_v40  ;;  %v2379_v61 = vpack.c.bf16 %v1791_v40, %v1788_v43 }
 0x1e8   : > { %2448 = vst [vmem:[%s4503_s10 + $0x18] sm:$0xff] %v2384_v8  }
 0x1e9   : > { %v1905_v18 = vadd.f32 %v2492_v44, %v1904_v59  ;;  %v1976_v32 = vadd.f32 %v1975_v14, %v1945_v58  ;;  %2447 = vst [vmem:[%s4503_s10 + $0x10] sm:$0xff] %v2379_v61  }
 0x1eb   : > { %v1977_v22 = vadd.f32 %v1976_v32, %v1946_v9  ;;  %v1906_v57 = vadd.f32 %v2493_v53, %v1905_v18 }
 0x1ed   : > { %v1978_v15 = vadd.f32 %v1977_v22, %v1947_v42 }
 0x1f7   : > { %v2496_v20 = vpop.f32.mrb[8].mxu0 }
 0x1f8   : > { %v1804_v34 = vpop.f32.mrb[9].mxu0  ;;  %v1950_v45 = vmul.f32 %v2496_v20, %v2496_v20 }
 0x1f9   : > { %v1907_v33 = vadd.f32 %v1906_v57, %v1804_v34  ;;  %v1948_v30 = vmul.f32 %v1804_v34, %v1804_v34  ;;  %v2497_v35 = vpop.f32.mrb[10].mxu0 }
 0x1fa   : > { %v2394_v46 = vpack.c.bf16 %v2497_v35, %v2496_v20  ;;  %v1807_v51 = vpop.f32.mrb[11].mxu0  ;;  %v1951_v55 = vmul.f32 %v2497_v35, %v2497_v35 }
 0x1fb   : > { %v1979_v12 = vadd.f32 %v1978_v15, %v1948_v30  ;;  %v1908_v16 = vadd.f32 %v1907_v33, %v1807_v51  ;;  %v1949_v23 = vmul.f32 %v1807_v51, %v1807_v51  ;;  %v2389_v52 = vpack.c.bf16 %v1807_v51, %v1804_v34 }
 0x1fc   : > { %2450 = vst [vmem:[%s4503_s10 + $0x28] sm:$0xff] %v2394_v46  }
 0x1fd   : > { %v1909_v63 = vadd.f32 %v2496_v20, %v1908_v16  ;;  %v1980_v21 = vadd.f32 %v1979_v12, %v1949_v23  ;;  %2449 = vst [vmem:[%s4503_s10 + $0x20] sm:$0xff] %v2389_v52  }
 0x1ff   : > { %v1981_v39 = vadd.f32 %v1980_v21, %v1950_v45  ;;  %v1910_v48 = vadd.f32 %v2497_v35, %v1909_v63 }
 0x201   : > { %v1982_v50 = vadd.f32 %v1981_v39, %v1951_v55 }
 0x20e   : > { %v2500_v11 = vpop.f32.mrb[12].mxu0 }
 0x20f   : > { %v1820_v38 = vpop.f32.mrb[13].mxu0  ;;  %v1954_v26 = vmul.f32 %v2500_v11, %v2500_v11 }
 0x210   : > { %v1911_v17 = vadd.f32 %v1910_v48, %v1820_v38  ;;  %v1952_v49 = vmul.f32 %v1820_v38, %v1820_v38  ;;  %v2501_v47 = vpop.f32.mrb[14].mxu0 }
 0x211   : > { %v2404_v7 = vpack.c.bf16 %v2501_v47, %v2500_v11  ;;  %v1823_v19 = vpop.f32.mrb[15].mxu0  ;;  %v1955_v62 = vmul.f32 %v2501_v47, %v2501_v47 }
 0x212   : > { %v1983_v36 = vadd.f32 %v1982_v50, %v1952_v49  ;;  %v1912_v24 = vadd.f32 %v1911_v17, %v1823_v19  ;;  %v1953_v0 = vmul.f32 %v1823_v19, %v1823_v19  ;;  %v2399_v37 = vpack.c.bf16 %v1823_v19, %v1820_v38 }
 0x213   : > { %2452 = vst [vmem:[%s4503_s10 + $0x38] sm:$0xff] %v2404_v7  }
 0x214   : > { %v1913_v5 = vadd.f32 %v2500_v11, %v1912_v24  ;;  %v1984_v1 = vadd.f32 %v1983_v36, %v1953_v0  ;;  %2451 = vst [vmem:[%s4503_s10 + $0x30] sm:$0xff] %v2399_v37  }
 0x216   : > { %v1985_v41 = vadd.f32 %v1984_v1, %v1954_v26  ;;  %v1914_v2 = vadd.f32 %v2501_v47, %v1913_v5 }
 0x218   : > { %v1986_v31 = vadd.f32 %v1985_v41, %v1955_v62 }
 0x226   : > { %v2504_v4 = vpop.f32.mrb[0].mxu1 }
 0x227   : > { %v1836_v25 = vpop.f32.mrb[1].mxu1  ;;  %v1958_v3 = vmul.f32 %v2504_v4, %v2504_v4 }
 0x228   : > { %v1915_v28 = vadd.f32 %v1914_v2, %v1836_v25  ;;  %v1956_v6 = vmul.f32 %v1836_v25, %v1836_v25  ;;  %v2505_v60 = vpop.f32.mrb[2].mxu1 }
 0x229   : > { %v2414_v56 = vpack.c.bf16 %v2505_v60, %v2504_v4  ;;  %v1839_v54 = vpop.f32.mrb[3].mxu1  ;;  %v1959_v8 = vmul.f32 %v2505_v60, %v2505_v60 }
 0x22a   : > { %v1987_v10 = vadd.f32 %v1986_v31, %v1956_v6  ;;  %v1916_v29 = vadd.f32 %v1915_v28, %v1839_v54  ;;  %v1957_v44 = vmul.f32 %v1839_v54, %v1839_v54  ;;  %v2409_v43 = vpack.c.bf16 %v1839_v54, %v1836_v25 }
 0x22b   : > { %2454 = vst [vmem:[%s4503_s10 + $0x48] sm:$0xff] %v2414_v56  }
 0x22c   : > { %v1917_v13 = vadd.f32 %v2504_v4, %v1916_v29  ;;  %v1988_v53 = vadd.f32 %v1987_v10, %v1957_v44  ;;  %2453 = vst [vmem:[%s4503_s10 + $0x40] sm:$0xff] %v2409_v43  }
 0x22e   : > { %v1989_v40 = vadd.f32 %v1988_v53, %v1958_v3  ;;  %v1918_v14 = vadd.f32 %v2505_v60, %v1917_v13 }
 0x230   : > { %v1990_v59 = vadd.f32 %v1989_v40, %v1959_v8 }
 0x23e   : > { %v2508_v58 = vpop.f32.mrb[4].mxu1 }
 0x23f   : > { %v1852_v61 = vpop.f32.mrb[5].mxu1  ;;  %v1962_v34 = vmul.f32 %v2508_v58, %v2508_v58 }
 0x240   : > { %v1919_v9 = vadd.f32 %v1918_v14, %v1852_v61  ;;  %v1960_v18 = vmul.f32 %v1852_v61, %v1852_v61  ;;  %v2509_v32 = vpop.f32.mrb[6].mxu1 }
 0x241   : > { %v2424_v42 = vpack.c.bf16 %v2509_v32, %v2508_v58  ;;  %v1855_v22 = vpop.f32.mrb[7].mxu1  ;;  %v1963_v35 = vmul.f32 %v2509_v32, %v2509_v32 }
 0x242   : > { %v1991_v57 = vadd.f32 %v1990_v59, %v1960_v18  ;;  %v1920_v15 = vadd.f32 %v1919_v9, %v1855_v22  ;;  %v1961_v27 = vmul.f32 %v1855_v22, %v1855_v22  ;;  %v2419_v20 = vpack.c.bf16 %v1855_v22, %v1852_v61  ;;  %v1899_v59 = vld [vmem:[%s4513_s18] sm:$0x1]  ;;  %v1939_v9 = vld [vmem:[%s4513_s18 + $0x1] sm:$0x1] }
 0x243   : > { %2456 = vst [vmem:[%s4503_s10 + $0x58] sm:$0xff] %v2424_v42  }
 0x244   : > { %v1921_v33 = vadd.f32 %v2508_v58, %v1920_v15  ;;  %v1992_v30 = vadd.f32 %v1991_v57, %v1961_v27  ;;  %2455 = vst [vmem:[%s4503_s10 + $0x50] sm:$0xff] %v2419_v20  }
 0x246   : > { %v1993_v46 = vadd.f32 %v1992_v30, %v1962_v34  ;;  %v1922_v51 = vadd.f32 %v2509_v32, %v1921_v33 }
 0x248   : > { %v1994_v12 = vadd.f32 %v1993_v46, %v1963_v35 }
 0x256   : > { %v2512_v16 = vpop.f32.mrb[8].mxu1 }
 0x257   : > { %v1868_v23 = vpop.f32.mrb[9].mxu1  ;;  %v1966_v38 = vmul.f32 %v2512_v16, %v2512_v16 }
 0x258   : > { %v1923_v52 = vadd.f32 %v1922_v51, %v1868_v23  ;;  %v1964_v45 = vmul.f32 %v1868_v23, %v1868_v23  ;;  %v2513_v63 = vpop.f32.mrb[10].mxu1 }
 0x259   : > { %v2434_v21 = vpack.c.bf16 %v2513_v63, %v2512_v16  ;;  %v1871_v55 = vpop.f32.mrb[11].mxu1  ;;  %v1967_v47 = vmul.f32 %v2513_v63, %v2513_v63 }
 0x25a   : > { %v1995_v39 = vadd.f32 %v1994_v12, %v1964_v45  ;;  %v1924_v48 = vadd.f32 %v1923_v52, %v1871_v55  ;;  %v1965_v50 = vmul.f32 %v1871_v55, %v1871_v55  ;;  %v2429_v11 = vpack.c.bf16 %v1871_v55, %v1868_v23 }
 0x25b   : > { %2458 = vst [vmem:[%s4503_s10 + $0x68] sm:$0xff] %v2434_v21  }
 0x25c   : > { %v1925_v17 = vadd.f32 %v2512_v16, %v1924_v48  ;;  %v1996_v49 = vadd.f32 %v1995_v39, %v1965_v50  ;;  %2457 = vst [vmem:[%s4503_s10 + $0x60] sm:$0xff] %v2429_v11  }
 0x25e   : > { %v1997_v7 = vadd.f32 %v1996_v49, %v1966_v38  ;;  %v1926_v19 = vadd.f32 %v2513_v63, %v1925_v17 }
 0x260   : > { %v1998_v36 = vadd.f32 %v1997_v7, %v1967_v47 }
 0x26e   : > { %v2516_v24 = vpop.f32.mrb[12].mxu1 }
 0x26f   : > { %v1884_v0 = vpop.f32.mrb[13].mxu1  ;;  %v1970_v25 = vmul.f32 %v2516_v24, %v2516_v24 }
 0x270   : > { %v1927_v37 = vadd.f32 %v1926_v19, %v1884_v0  ;;  %v1968_v26 = vmul.f32 %v1884_v0, %v1884_v0  ;;  %v2517_v5 = vpop.f32.mrb[14].mxu1 }
 0x271   : > { %v2444_v1 = vpack.c.bf16 %v2517_v5, %v2516_v24  ;;  %v1887_v62 = vpop.f32.mrb[15].mxu1  ;;  %v1971_v60 = vmul.f32 %v2517_v5, %v2517_v5 }
 0x272   : > { %v1999_v41 = vadd.f32 %v1998_v36, %v1968_v26  ;;  %v1928_v2 = vadd.f32 %v1927_v37, %v1887_v62  ;;  %v1969_v31 = vmul.f32 %v1887_v62, %v1887_v62  ;;  %v2439_v4 = vpack.c.bf16 %v1887_v62, %v1884_v0 }
 0x273   : > { %2460 = vst [vmem:[%s4503_s10 + $0x78] sm:$0xff] %v2444_v1  }
 0x274   : > { %v1929_v28 = vadd.f32 %v2516_v24, %v1928_v2  ;;  %v2000_v6 = vadd.f32 %v1999_v41, %v1969_v31  ;;  %2459 = vst [vmem:[%s4503_s10 + $0x70] sm:$0xff] %v2439_v4  }
 0x276   : > { %v1930_v56 = vadd.f32 %v2517_v5, %v1929_v28  ;;  %v2001_v54 = vadd.f32 %v2000_v6, %v1970_v25 }
 0x278   : > { %v1931_v10 = vrot.slane %v1930_v56, 4  ;;  %v2002_v29 = vadd.f32 %v2001_v54, %v1971_v60 }
 0x27a   : > { %v1932_v44 = vadd.f32 %v1931_v10, %v1930_v56  ;;  %v2003_v43 = vrot.slane %v2002_v29, 4 }
 0x27c   : > { %v1933_v3 = vrot.slane %v1932_v44, 2  ;;  %v2004_v13 = vadd.f32 %v2003_v43, %v2002_v29 }
 0x27e   : > { %v1934_v53 = vadd.f32 %v1933_v3, %v1932_v44  ;;  %v2005_v8 = vrot.slane %v2004_v13, 2 }
 0x280   : > { %v1935_v40 = vrot.slane %v1934_v53, 1  ;;  %v2006_v14 = vadd.f32 %v2005_v8, %v2004_v13 }
 0x282   : > { %v1936_v58 = vadd.f32 %v1935_v40, %v1934_v53  ;;  %v2007_v61 = vrot.slane %v2006_v14, 1 }
 0x284   : > { %v1937_v18 = vadd.f32 %v1936_v58, %v1899_v59  ;;  %v2008_v32 = vadd.f32 %v2007_v61, %v2006_v14 }
 0x286   : > { %1938 = vst [vmem:[%s4513_s18] sm:$0x1] %v1937_v18  ;;  %v2009_v42 = vadd.f32 %v2008_v32, %v1939_v9 }
 0x288   : > { %2010 = vst [vmem:[%s4513_s18 + $0x1] sm:$0x1] %v2009_v42 }
 0x289 PF: > { %s14_s14 = sadd.s32 1, %s3224_s14   ;;  %s4672_s12 = smov %s3220_s13 }
 0x28a   : > { %p11_p5 = scmp.ge.s32.totalorder %s14_s14, 4   ;;  %s4673_s13 = smov %s4675_s15 }
 0x28c   :  { %13 = sbr.rel (!%p11_p5) target bundleno = 2 (0x2), region = 74 }

</bundles_post_ra>
